<compile_context>
chip_gen: v6e
topology: v6e:2x2x1
jax: 0.10.0
libtpu: 0.0.40
codegen_flags: <defaults>
</compile_context>

<pallas_src>
import functools

import jax
import jax.numpy as jnp
from jax.experimental import pallas as pl
from jax.experimental.pallas import tpu as pltpu


def _round_up(v, m):
    return (v + m - 1) // m * m


# ----------------------------------------------------------------------------
# Pallas kernel: conv3x3 + bias + ReLU + global-average-pool + decoder Linear
# for one image per grid step.
# ----------------------------------------------------------------------------
def _encoder_decoder_kernel(x_ref, w_enc_ref, b_enc_ref, w_dec_ref, b_dec_ref,
                            out_ref, *, H, W, kh, kw, inv_hw):
    # x_ref     : (1, H+kh-1, W+kw-1, C)  halo-padded NHWC image (bf16/f32)
    # w_enc_ref : (kh*kw, C, F_pad)       conv weight, tap-major (bf16/f32)
    # b_enc_ref : (1, F_pad)              conv bias (f32), resident
    # w_dec_ref : (F_pad, O_pad)          decoder weight (f32), resident
    # b_dec_ref : (1, O_pad)              decoder bias (f32), resident
    # out_ref   : (1, 8, O_pad)           decoder output, sublane-replicated
    f_pad = w_enc_ref.shape[-1]
    xv = x_ref[...]                                        # (1, Hp, Wp, C)

    # Conv as kh*kw shifted-window matmuls (contraction over C), f32 acc.
    # Window reshape is a leading-dim collapse (W multiple of 8/16), cheap.
    acc = jnp.zeros((H * W, f_pad), jnp.float32)
    for i in range(kh):
        for j in range(kw):
            win = xv[0, i:i + H, j:j + W, :]               # (H, W, C)
            win2d = win.reshape(H * W, win.shape[-1])      # (H*W, C)
            acc = acc + jnp.dot(win2d, w_enc_ref[i * kw + j],
                                preferred_element_type=jnp.float32)

    h = jnp.maximum(acc + b_enc_ref[...], 0.0)             # bias + ReLU, f32

    # Global average pool over all H*W positions -> (1, F_pad).
    feat = jnp.sum(h, axis=0, keepdims=True) * inv_hw

    # Fused decoder Linear on a sublane-replicated (8, F_pad) tile so both the
    # MXU matmul and the output store are (8, 128)-shaped and unmasked.
    feat8 = jnp.broadcast_to(feat, (8, f_pad))
    out8 = jnp.dot(feat8, w_dec_ref[...],
                   preferred_element_type=jnp.float32) + b_dec_ref[...]
    out_ref[...] = out8[None, :, :].astype(out_ref.dtype)


# ----------------------------------------------------------------------------
# XLA glue: NCHW -> halo-padded NHWC + lane-dense parameter layout.
# ----------------------------------------------------------------------------
@functools.partial(jax.jit,
                   static_argnames=("num_kpts", "num_distances", "use_bf16"))
def backbone_only_displacement_forward(x, params, *, num_kpts, num_distances,
                                       use_bf16=True):
    """x: (B, C, H, W) float32 (PyTorch NCHW layout).
    Returns (kpts (B, num_kpts, 2), distances (B, num_distances))."""
    w_conv, b_conv, w_dec, b_dec = (params["w_conv"], params["b_conv"],
                                    params["w_dec"], params["b_dec"])
    B, C, H, W = x.shape
    F_feat, _, kh, kw = w_conv.shape
    assert kh % 2 == 1 and kw % 2 == 1, "synthetic encoder assumes odd kernel"
    ph, pw = kh // 2, kw // 2
    O = num_kpts * 2 + num_distances

    F_pad = _round_up(F_feat, 128)
    O_pad = _round_up(O, 128)
    in_dtype = jnp.bfloat16 if use_bf16 else jnp.float32

    # Raw halo-padded NHWC input: the ONLY per-pixel HBM stream the kernel
    # reads (no im2col, no contraction-axis padding in HBM).
    xp = jnp.transpose(x, (0, 2, 3, 1))                            # (B,H,W,C)
    xp = jnp.pad(xp, ((0, 0), (ph, ph), (pw, pw), (0, 0)))
    xp = xp.astype(in_dtype)                                       # (B,Hp,Wp,C)
    Hp, Wp = H + 2 * ph, W + 2 * pw

    # Conv weight, tap-major (i, j, c, f) -> (kh*kw, C, F_pad); bias f32.
    w_enc = jnp.transpose(w_conv, (2, 3, 1, 0)).reshape(kh * kw, C, F_feat)
    w_enc = jnp.pad(w_enc, ((0, 0), (0, 0), (0, F_pad - F_feat)))
    w_enc = w_enc.astype(in_dtype)
    b_enc = jnp.pad(b_conv, (0, F_pad - F_feat)).reshape(1, F_pad)
    b_enc = b_enc.astype(jnp.float32)

    # Decoder params stay f32 (tiny), padded to lane-dense tiles.
    w_dec_p = jnp.pad(w_dec.T.astype(jnp.float32),
                      ((0, F_pad - F_feat), (0, O_pad - O)))
    b_dec_p = jnp.pad(b_dec.astype(jnp.float32),
                      (0, O_pad - O)).reshape(1, O_pad)

    kernel = functools.partial(_encoder_decoder_kernel, H=H, W=W, kh=kh,
                               kw=kw, inv_hw=1.0 / (H * W))

    out_full = pl.pallas_call(
        kernel,
        out_shape=jax.ShapeDtypeStruct((B, 8, O_pad), jnp.float32),
        grid_spec=pltpu.PrefetchScalarGridSpec(
            num_scalar_prefetch=0,
            grid=(B,),                                     # one image per step
            in_specs=[
                pl.BlockSpec((1, Hp, Wp, C), lambda b: (b, 0, 0, 0)),
                pl.BlockSpec((kh * kw, C, F_pad), lambda b: (0, 0, 0)),
                pl.BlockSpec((1, F_pad), lambda b: (0, 0)),
                pl.BlockSpec((F_pad, O_pad), lambda b: (0, 0)),
                pl.BlockSpec((1, O_pad), lambda b: (0, 0)),
            ],
            out_specs=pl.BlockSpec((1, 8, O_pad), lambda b: (b, 0, 0)),
        ),
        compiler_params=pltpu.CompilerParams(
            dimension_semantics=("parallel",),
            vmem_limit_bytes=32 * 1024 * 1024),
    )(xp, w_enc, b_enc, w_dec_p, b_dec_p)

    out = out_full[:, 0, :O]
    kpts = out[:, :num_kpts * 2].reshape(B, num_kpts, 2)
    distances = out[:, num_kpts * 2:]
    return kpts, distances


def _reference_forward(x, params, num_kpts, num_distances):
    """Pure-JAX f32 reference for correctness checking."""
    w_conv, b_conv, w_dec, b_dec = (params["w_conv"], params["b_conv"],
                                    params["w_dec"], params["b_dec"])
    kh, kw = w_conv.shape[2], w_conv.shape[3]
    h = jax.lax.conv_general_dilated(
        x, w_conv, window_strides=(1, 1),
        padding=[(kh // 2, kh // 2), (kw // 2, kw // 2)],
        dimension_numbers=("NCHW", "OIHW", "NCHW"))
    h = jnp.maximum(h + b_conv[None, :, None, None], 0.0)
    feat = jnp.mean(h, axis=(2, 3))                                # (B, F)
    out = feat @ w_dec.T + b_dec
    kpts = out[:, :num_kpts * 2].reshape(x.shape[0], num_kpts, 2)
    return kpts, out[:, num_kpts * 2:]


if __name__ == "__main__":
    # Small deterministic config.
    B, C, H, W = 2, 4, 16, 16
    F_FEAT = 32            # image_encoder.img_feature_size
    NUM_KPTS = 5
    NUM_DIST = 3

    key = jax.random.PRNGKey(0)
    k_x, k_wc, k_bc, k_wd, k_bd = jax.random.split(key, 5)

    x = jax.random.normal(k_x, (B, C, H, W), dtype=jnp.float32)
    params = {
        "w_conv": jax.random.normal(k_wc, (F_FEAT, C, 3, 3), jnp.float32) * 0.1,
        "b_conv": jax.random.normal(k_bc, (F_FEAT,), jnp.float32) * 0.1,
        "w_dec": jax.random.normal(k_wd, (NUM_KPTS * 2 + NUM_DIST, F_FEAT),
                                   jnp.float32) * 0.1,
        "b_dec": jax.random.normal(k_bd, (NUM_KPTS * 2 + NUM_DIST,),
                                   jnp.float32) * 0.1,
    }

    ref_kpts, ref_dists = _reference_forward(x, params, NUM_KPTS, NUM_DIST)

    # bf16 MXU path (default).
    kpts, dists = backbone_only_displacement_forward(
        x, params, num_kpts=NUM_KPTS, num_distances=NUM_DIST)
    jax.block_until_ready((kpts, dists))
    assert kpts.shape == (B, NUM_KPTS, 2)
    assert dists.shape == (B, NUM_DIST)
    assert jnp.allclose(kpts, ref_kpts, atol=2e-2, rtol=2e-2)
    assert jnp.allclose(dists, ref_dists, atol=2e-2, rtol=2e-2)

    # f32 path: tighter-tolerance correctness check of the same kernel.
    kpts32, dists32 = backbone_only_displacement_forward(
        x, params, num_kpts=NUM_KPTS, num_distances=NUM_DIST, use_bf16=False)
    jax.block_until_ready((kpts32, dists32))
    assert jnp.allclose(kpts32, ref_kpts, atol=1e-3, rtol=1e-3)
    assert jnp.allclose(dists32, ref_dists, atol=1e-3, rtol=1e-3)

    print("KERNEL_OK")
</pallas_src>

<mosaic_0001>
module attributes {stable_mosaic.version = 11 : i64} {
  func.func @_encoder_decoder_kernel(%arg0: i32, %arg1: memref<1x18x18x4xbf16, #tpu.memory_space<vmem>>, %arg2: memref<9x4x128xbf16, #tpu.memory_space<vmem>>, %arg3: memref<1x128xf32, #tpu.memory_space<vmem>>, %arg4: memref<128x128xf32, #tpu.memory_space<vmem>>, %arg5: memref<1x128xf32, #tpu.memory_space<vmem>>, %arg6: memref<1x8x128xf32, #tpu.memory_space<vmem>>) attributes {dimension_semantics = [#tpu.dimension_semantics<parallel>], iteration_bounds = array<i64: 2>, scalar_prefetch = 0 : i64, scratch_operands = 0 : i64, tpu.core_type = #tpu.core_type<tc>, window_params = [{transform_indices = @transform_0, window_bounds = array<i64: 1, 18, 18, 4>}, {pipeline_mode = #tpu.pipeline_mode<synchronous>, transform_indices = @transform_1, window_bounds = array<i64: 9, 4, 128>}, {pipeline_mode = #tpu.pipeline_mode<synchronous>, transform_indices = @transform_2, window_bounds = array<i64: 1, 128>}, {pipeline_mode = #tpu.pipeline_mode<synchronous>, transform_indices = @transform_3, window_bounds = array<i64: 128, 128>}, {pipeline_mode = #tpu.pipeline_mode<synchronous>, transform_indices = @transform_4, window_bounds = array<i64: 1, 128>}, {transform_indices = @transform_5, window_bounds = array<i64: 1, 8, 128>}]} {
    %c0 = arith.constant 0 : index
    %c0_0 = arith.constant 0 : index
    %c0_1 = arith.constant 0 : index
    %c0_2 = arith.constant 0 : index
    %0 = vector.load %arg1[%c0, %c0_0, %c0_1, %c0_2] : memref<1x18x18x4xbf16, #tpu.memory_space<vmem>>, vector<1x18x18x4xbf16>
    %cst = arith.constant 0.000000e+00 : f32
    %1 = vector.broadcast %cst : f32 to vector<256x128xf32>
    %2 = vector.extract_strided_slice %0 {offsets = [0, 0, 0, 0], sizes = [1, 16, 16, 4], strides = [1, 1, 1, 1]} : vector<1x18x18x4xbf16> to vector<1x16x16x4xbf16>
    %3 = vector.shape_cast %2 : vector<1x16x16x4xbf16> to vector<16x16x4xbf16>
    %4 = vector.shape_cast %3 : vector<16x16x4xbf16> to vector<256x4xbf16>
    %c0_3 = arith.constant 0 : index
    %c0_4 = arith.constant 0 : index
    %c0_5 = arith.constant 0 : index
    %5 = vector.load %arg2[%c0_3, %c0_4, %c0_5] : memref<9x4x128xbf16, #tpu.memory_space<vmem>>, vector<1x4x128xbf16>
    %6 = vector.shape_cast %5 : vector<1x4x128xbf16> to vector<4x128xbf16>
    %cst_6 = arith.constant dense<0.000000e+00> : vector<256x128xf32>
    %7 = tpu.matmul %4, %6, %cst_6 {dimension_numbers = #tpu.dot_dimension_numbers<[1], [0], [0], [1], [0, 0, 1, 1], [], []>} : vector<256x4xbf16>, vector<4x128xbf16>, vector<256x128xf32> -> vector<256x128xf32>
    %8 = arith.addf %1, %7 : vector<256x128xf32>
    %9 = vector.extract_strided_slice %0 {offsets = [0, 0, 1, 0], sizes = [1, 16, 16, 4], strides = [1, 1, 1, 1]} : vector<1x18x18x4xbf16> to vector<1x16x16x4xbf16>
    %10 = vector.shape_cast %9 : vector<1x16x16x4xbf16> to vector<16x16x4xbf16>
    %11 = vector.shape_cast %10 : vector<16x16x4xbf16> to vector<256x4xbf16>
    %c1 = arith.constant 1 : index
    %c0_7 = arith.constant 0 : index
    %c0_8 = arith.constant 0 : index
    %12 = vector.load %arg2[%c1, %c0_7, %c0_8] : memref<9x4x128xbf16, #tpu.memory_space<vmem>>, vector<1x4x128xbf16>
    %13 = vector.shape_cast %12 : vector<1x4x128xbf16> to vector<4x128xbf16>
    %cst_9 = arith.constant dense<0.000000e+00> : vector<256x128xf32>
    %14 = tpu.matmul %11, %13, %cst_9 {dimension_numbers = #tpu.dot_dimension_numbers<[1], [0], [0], [1], [0, 0, 1, 1], [], []>} : vector<256x4xbf16>, vector<4x128xbf16>, vector<256x128xf32> -> vector<256x128xf32>
    %15 = arith.addf %8, %14 : vector<256x128xf32>
    %16 = vector.extract_strided_slice %0 {offsets = [0, 0, 2, 0], sizes = [1, 16, 16, 4], strides = [1, 1, 1, 1]} : vector<1x18x18x4xbf16> to vector<1x16x16x4xbf16>
    %17 = vector.shape_cast %16 : vector<1x16x16x4xbf16> to vector<16x16x4xbf16>
    %18 = vector.shape_cast %17 : vector<16x16x4xbf16> to vector<256x4xbf16>
    %c2 = arith.constant 2 : index
    %c0_10 = arith.constant 0 : index
    %c0_11 = arith.constant 0 : index
    %19 = vector.load %arg2[%c2, %c0_10, %c0_11] : memref<9x4x128xbf16, #tpu.memory_space<vmem>>, vector<1x4x128xbf16>
    %20 = vector.shape_cast %19 : vector<1x4x128xbf16> to vector<4x128xbf16>
    %cst_12 = arith.constant dense<0.000000e+00> : vector<256x128xf32>
    %21 = tpu.matmul %18, %20, %cst_12 {dimension_numbers = #tpu.dot_dimension_numbers<[1], [0], [0], [1], [0, 0, 1, 1], [], []>} : vector<256x4xbf16>, vector<4x128xbf16>, vector<256x128xf32> -> vector<256x128xf32>
    %22 = arith.addf %15, %21 : vector<256x128xf32>
    %23 = vector.extract_strided_slice %0 {offsets = [0, 1, 0, 0], sizes = [1, 16, 16, 4], strides = [1, 1, 1, 1]} : vector<1x18x18x4xbf16> to vector<1x16x16x4xbf16>
    %24 = vector.shape_cast %23 : vector<1x16x16x4xbf16> to vector<16x16x4xbf16>
    %25 = vector.shape_cast %24 : vector<16x16x4xbf16> to vector<256x4xbf16>
    %c3 = arith.constant 3 : index
    %c0_13 = arith.constant 0 : index
    %c0_14 = arith.constant 0 : index
    %26 = vector.load %arg2[%c3, %c0_13, %c0_14] : memref<9x4x128xbf16, #tpu.memory_space<vmem>>, vector<1x4x128xbf16>
    %27 = vector.shape_cast %26 : vector<1x4x128xbf16> to vector<4x128xbf16>
    %cst_15 = arith.constant dense<0.000000e+00> : vector<256x128xf32>
    %28 = tpu.matmul %25, %27, %cst_15 {dimension_numbers = #tpu.dot_dimension_numbers<[1], [0], [0], [1], [0, 0, 1, 1], [], []>} : vector<256x4xbf16>, vector<4x128xbf16>, vector<256x128xf32> -> vector<256x128xf32>
    %29 = arith.addf %22, %28 : vector<256x128xf32>
    %30 = vector.extract_strided_slice %0 {offsets = [0, 1, 1, 0], sizes = [1, 16, 16, 4], strides = [1, 1, 1, 1]} : vector<1x18x18x4xbf16> to vector<1x16x16x4xbf16>
    %31 = vector.shape_cast %30 : vector<1x16x16x4xbf16> to vector<16x16x4xbf16>
    %32 = vector.shape_cast %31 : vector<16x16x4xbf16> to vector<256x4xbf16>
    %c4 = arith.constant 4 : index
    %c0_16 = arith.constant 0 : index
    %c0_17 = arith.constant 0 : index
    %33 = vector.load %arg2[%c4, %c0_16, %c0_17] : memref<9x4x128xbf16, #tpu.memory_space<vmem>>, vector<1x4x128xbf16>
    %34 = vector.shape_cast %33 : vector<1x4x128xbf16> to vector<4x128xbf16>
    %cst_18 = arith.constant dense<0.000000e+00> : vector<256x128xf32>
    %35 = tpu.matmul %32, %34, %cst_18 {dimension_numbers = #tpu.dot_dimension_numbers<[1], [0], [0], [1], [0, 0, 1, 1], [], []>} : vector<256x4xbf16>, vector<4x128xbf16>, vector<256x128xf32> -> vector<256x128xf32>
    %36 = arith.addf %29, %35 : vector<256x128xf32>
    %37 = vector.extract_strided_slice %0 {offsets = [0, 1, 2, 0], sizes = [1, 16, 16, 4], strides = [1, 1, 1, 1]} : vector<1x18x18x4xbf16> to vector<1x16x16x4xbf16>
    %38 = vector.shape_cast %37 : vector<1x16x16x4xbf16> to vector<16x16x4xbf16>
    %39 = vector.shape_cast %38 : vector<16x16x4xbf16> to vector<256x4xbf16>
    %c5 = arith.constant 5 : index
    %c0_19 = arith.constant 0 : index
    %c0_20 = arith.constant 0 : index
    %40 = vector.load %arg2[%c5, %c0_19, %c0_20] : memref<9x4x128xbf16, #tpu.memory_space<vmem>>, vector<1x4x128xbf16>
    %41 = vector.shape_cast %40 : vector<1x4x128xbf16> to vector<4x128xbf16>
    %cst_21 = arith.constant dense<0.000000e+00> : vector<256x128xf32>
    %42 = tpu.matmul %39, %41, %cst_21 {dimension_numbers = #tpu.dot_dimension_numbers<[1], [0], [0], [1], [0, 0, 1, 1], [], []>} : vector<256x4xbf16>, vector<4x128xbf16>, vector<256x128xf32> -> vector<256x128xf32>
    %43 = arith.addf %36, %42 : vector<256x128xf32>
    %44 = vector.extract_strided_slice %0 {offsets = [0, 2, 0, 0], sizes = [1, 16, 16, 4], strides = [1, 1, 1, 1]} : vector<1x18x18x4xbf16> to vector<1x16x16x4xbf16>
    %45 = vector.shape_cast %44 : vector<1x16x16x4xbf16> to vector<16x16x4xbf16>
    %46 = vector.shape_cast %45 : vector<16x16x4xbf16> to vector<256x4xbf16>
    %c6 = arith.constant 6 : index
    %c0_22 = arith.constant 0 : index
    %c0_23 = arith.constant 0 : index
    %47 = vector.load %arg2[%c6, %c0_22, %c0_23] : memref<9x4x128xbf16, #tpu.memory_space<vmem>>, vector<1x4x128xbf16>
    %48 = vector.shape_cast %47 : vector<1x4x128xbf16> to vector<4x128xbf16>
    %cst_24 = arith.constant dense<0.000000e+00> : vector<256x128xf32>
    %49 = tpu.matmul %46, %48, %cst_24 {dimension_numbers = #tpu.dot_dimension_numbers<[1], [0], [0], [1], [0, 0, 1, 1], [], []>} : vector<256x4xbf16>, vector<4x128xbf16>, vector<256x128xf32> -> vector<256x128xf32>
    %50 = arith.addf %43, %49 : vector<256x128xf32>
    %51 = vector.extract_strided_slice %0 {offsets = [0, 2, 1, 0], sizes = [1, 16, 16, 4], strides = [1, 1, 1, 1]} : vector<1x18x18x4xbf16> to vector<1x16x16x4xbf16>
    %52 = vector.shape_cast %51 : vector<1x16x16x4xbf16> to vector<16x16x4xbf16>
    %53 = vector.shape_cast %52 : vector<16x16x4xbf16> to vector<256x4xbf16>
    %c7 = arith.constant 7 : index
    %c0_25 = arith.constant 0 : index
    %c0_26 = arith.constant 0 : index
    %54 = vector.load %arg2[%c7, %c0_25, %c0_26] : memref<9x4x128xbf16, #tpu.memory_space<vmem>>, vector<1x4x128xbf16>
    %55 = vector.shape_cast %54 : vector<1x4x128xbf16> to vector<4x128xbf16>
    %cst_27 = arith.constant dense<0.000000e+00> : vector<256x128xf32>
    %56 = tpu.matmul %53, %55, %cst_27 {dimension_numbers = #tpu.dot_dimension_numbers<[1], [0], [0], [1], [0, 0, 1, 1], [], []>} : vector<256x4xbf16>, vector<4x128xbf16>, vector<256x128xf32> -> vector<256x128xf32>
    %57 = arith.addf %50, %56 : vector<256x128xf32>
    %58 = vector.extract_strided_slice %0 {offsets = [0, 2, 2, 0], sizes = [1, 16, 16, 4], strides = [1, 1, 1, 1]} : vector<1x18x18x4xbf16> to vector<1x16x16x4xbf16>
    %59 = vector.shape_cast %58 : vector<1x16x16x4xbf16> to vector<16x16x4xbf16>
    %60 = vector.shape_cast %59 : vector<16x16x4xbf16> to vector<256x4xbf16>
    %c8 = arith.constant 8 : index
    %c0_28 = arith.constant 0 : index
    %c0_29 = arith.constant 0 : index
    %61 = vector.load %arg2[%c8, %c0_28, %c0_29] : memref<9x4x128xbf16, #tpu.memory_space<vmem>>, vector<1x4x128xbf16>
    %62 = vector.shape_cast %61 : vector<1x4x128xbf16> to vector<4x128xbf16>
    %cst_30 = arith.constant dense<0.000000e+00> : vector<256x128xf32>
    %63 = tpu.matmul %60, %62, %cst_30 {dimension_numbers = #tpu.dot_dimension_numbers<[1], [0], [0], [1], [0, 0, 1, 1], [], []>} : vector<256x4xbf16>, vector<4x128xbf16>, vector<256x128xf32> -> vector<256x128xf32>
    %64 = arith.addf %57, %63 : vector<256x128xf32>
    %c0_31 = arith.constant 0 : index
    %c0_32 = arith.constant 0 : index
    %65 = vector.load %arg3[%c0_31, %c0_32] : memref<1x128xf32, #tpu.memory_space<vmem>>, vector<1x128xf32>
    %66 = vector.broadcast %65 : vector<1x128xf32> to vector<256x128xf32>
    %67 = arith.addf %64, %66 : vector<256x128xf32>
    %cst_33 = arith.constant 0.000000e+00 : f32
    %68 = vector.broadcast %cst_33 : f32 to vector<256x128xf32>
    %69 = arith.maximumf %67, %68 : vector<256x128xf32>
    %cst_34 = arith.constant dense<0.000000e+00> : vector<128xf32>
    %70 = vector.multi_reduction <add>, %69, %cst_34 [0] : vector<256x128xf32> to vector<128xf32>
    %71 = vector.shape_cast %70 : vector<128xf32> to vector<1x128xf32>
    %cst_35 = arith.constant 3.906250e-03 : f32
    %72 = vector.broadcast %cst_35 : f32 to vector<1x128xf32>
    %73 = arith.mulf %71, %72 : vector<1x128xf32>
    %74 = vector.shape_cast %73 : vector<1x128xf32> to vector<1x128xf32>
    %75 = vector.broadcast %74 : vector<1x128xf32> to vector<8x128xf32>
    %c0_36 = arith.constant 0 : index
    %c0_37 = arith.constant 0 : index
    %76 = vector.load %arg4[%c0_36, %c0_37] : memref<128x128xf32, #tpu.memory_space<vmem>>, vector<128x128xf32>
    %cst_38 = arith.constant dense<0.000000e+00> : vector<8x128xf32>
    %77 = tpu.matmul %75, %76, %cst_38 {dimension_numbers = #tpu.dot_dimension_numbers<[1], [0], [0], [1], [0, 0, 1, 1], [], []>} : vector<8x128xf32>, vector<128x128xf32>, vector<8x128xf32> -> vector<8x128xf32>
    %c0_39 = arith.constant 0 : index
    %c0_40 = arith.constant 0 : index
    %78 = vector.load %arg5[%c0_39, %c0_40] : memref<1x128xf32, #tpu.memory_space<vmem>>, vector<1x128xf32>
    %79 = vector.broadcast %78 : vector<1x128xf32> to vector<8x128xf32>
    %80 = arith.addf %77, %79 : vector<8x128xf32>
    %81 = vector.shape_cast %80 : vector<8x128xf32> to vector<1x8x128xf32>
    %c0_41 = arith.constant 0 : index
    %c0_42 = arith.constant 0 : index
    %c0_43 = arith.constant 0 : index
    %82 = vector.load %arg6[%c0_41, %c0_42, %c0_43] : memref<1x8x128xf32, #tpu.memory_space<vmem>>, vector<1x8x128xf32>
    tpu.vector_store %arg6[%c0_41, %c0_42, %c0_43], %81 {strides = array<i32>} : memref<1x8x128xf32, #tpu.memory_space<vmem>>, vector<1x8x128xf32>,
    return
  }
  func.func @transform_0(%arg0: i32) -> (i32, i32, i32, i32) {
    %c0_i32 = arith.constant 0 : i32
    %c0_i32_0 = arith.constant 0 : i32
    %c0_i32_1 = arith.constant 0 : i32
    %c0_i32_2 = arith.constant 0 : i32
    return %arg0, %c0_i32, %c0_i32_0, %c0_i32_1 : i32, i32, i32, i32
  }
  func.func @transform_1(%arg0: i32) -> (i32, i32, i32) {
    %c0_i32 = arith.constant 0 : i32
    %c0_i32_0 = arith.constant 0 : i32
    %c0_i32_1 = arith.constant 0 : i32
    %c0_i32_2 = arith.constant 0 : i32
    return %c0_i32, %c0_i32_0, %c0_i32_1 : i32, i32, i32
  }
  func.func @transform_2(%arg0: i32) -> (i32, i32) {
    %c0_i32 = arith.constant 0 : i32
    %c0_i32_0 = arith.constant 0 : i32
    %c0_i32_1 = arith.constant 0 : i32
    return %c0_i32, %c0_i32_0 : i32, i32
  }
  func.func @transform_3(%arg0: i32) -> (i32, i32) {
    %c0_i32 = arith.constant 0 : i32
    %c0_i32_0 = arith.constant 0 : i32
    %c0_i32_1 = arith.constant 0 : i32
    return %c0_i32, %c0_i32_0 : i32, i32
  }
  func.func @transform_4(%arg0: i32) -> (i32, i32) {
    %c0_i32 = arith.constant 0 : i32
    %c0_i32_0 = arith.constant 0 : i32
    %c0_i32_1 = arith.constant 0 : i32
    return %c0_i32, %c0_i32_0 : i32, i32
  }
  func.func @transform_5(%arg0: i32) -> (i32, i32, i32) {
    %c0_i32 = arith.constant 0 : i32
    %c0_i32_0 = arith.constant 0 : i32
    %c0_i32_1 = arith.constant 0 : i32
    return %arg0, %c0_i32, %c0_i32_0 : i32, i32, i32
  }
}

</mosaic_0001>

<bundles_post_ra>
// kernel: backbone_only_displacement_forward.1
= control target key start
LH: loop header
LB: loop body
LE: loop exit
PB: predicated region body
PF: predicated region fallthrough
CT: control target
= control target key end

     0   :  { %s4022_s18 = smov 0   ;;  %s5509_s0 = inlined_call_operand.vmem [shape: bf16[2,18,18,4], index: 0, kind: input, shape index: {}]   ;;  %s5510_s1 = inlined_call_operand.vmem [shape: bf16[9,4,128], index: 1, kind: input, shape index: {}]   ;;  %s5511_s2 = inlined_call_operand.vmem [shape: f32[1,128], index: 2, kind: input, shape index: {}]   ;;  %s5512_s3 = inlined_call_operand.vmem [shape: f32[128,128], index: 3, kind: input, shape index: {}]   ;;  %s5513_s4 = inlined_call_operand.vmem [shape: f32[1,128], index: 4, kind: input, shape index: {}]   ;;  %s5514_s5 = inlined_call_operand.vmem [shape: f32[2,8,128], index: 5, kind: output, shape index: {}]  }
   0x1 LB: > { %s3195_s19 = sadd.s32 4294967295, %s3988_s18   ;;  %p3199_p0 = scmp.ge.s32.totalorder %s3988_s18, 1  ;;  %s3988_s18 = sphi %s4022_s18, %s15_s18  }
   0x2   : > { %p187_p1 = scmp.lt.s32.totalorder %s3988_s18, 3 }
   0x4   : > { %p188_p2 = pnand %p3199_p0, %p187_p1 }
   0x6   : > { %191 = sbr.rel (%p188_p2) target bundleno = 770 (0x302), region = 40 }
   0xb   : > { %v3202_v0 = vld [vmem:[%s5510_s1 + $0x2] sm:$0x3]  ;;  %vm765_vm0 = vcmask 1041408   ;;  %p214_p3 = scmp.lt.s32.totalorder %s3195_s19, 1  ;;  %v3283_v2 = vld [vmem:[%s5510_s1 + $0x4] sm:$0x3] }
   0xc   : > { %3943 = vmatprep.subr.msk.bf16.mxu0 %vm765_vm0, %v3202_v0  ;;  %3944 = vmatprep.subr.msk.bf16.mxu1 %vm765_vm0, %v3202_v0  ;;  %v767_v1 = vsel %vm765_vm0, %v3202_v0, 0  ;;  %v278_v3 = vld [vmem:[%s5510_s1] sm:$0x3]  ;;  %vm279_vm1 = vsmask.f32 3328  ;;  %v4053_v4 = vsel %vm765_vm0, %v3283_v2, 0 }
   0xd   : > { %3601 = vmatpush3.bf16.msra.mxu0 %v767_v1  ;;  %3942 = vmatpush3.bf16.msra.mxu1 %v767_v1  ;;  %s5662_s19 = smov (!%p214_p3, %s3195_s19), 1  ;;  %vm280_vm2 = vsmask.f32 7440  ;;  %vm716_vm3 = vcmask 31744   ;;  %v4079_v16 = vsel %vm765_vm0, %v278_v3, 0  ;;  %vm1238_vm5 = vcmask 1042432  }
   0xe   : > { %3946 = vmatprep.subr.msk.bf16.mxu0 %vm765_vm0, %v3283_v2  ;;  %3945 = vmatprep.subr.msk.bf16.mxu1 %vm765_vm0, %v278_v3  ;;  %s3953_s26 = smul.u32 216, %s5662_s19  ;;  %v4084_v21 = vld [vmem:[%s5510_s1 + $0x6] sm:$0x3]  ;;  %vm4099_vm4 = vmor %vm279_vm1, %vm280_vm2  ;;  %vm1239_vm6 = vcmask 1046532   ;;  %vm3991_vm8 = vmmov 0   ;;  %s3201_s30 = sshll.u32 %s5662_s19, 3 }
   0xf   : > { %v4105_v36 = vsel %vm765_vm0, %v4084_v21, 0  ;;  %vm4447_vm7 = vmor %vm1238_vm5, %vm1239_vm6  ;;  %s222_s10 = scalar_lea.vmem %s5514_s5, %s3201_s30 }
  0x10   : > { %s4050_s29 = scalar_lea.vmem %s5509_s0, %s3953_s26 }
  0x11   : > { %v4056_v5 = vld [vmem:[%s4050_s29] sm:$0xf]  ;;  %v4059_v6 = vld [vmem:[%s4050_s29 + $0x4] sm:$0xf]  ;;  %v4062_v7 = vld [vmem:[%s4050_s29 + $0x8] sm:$0x1] }
  0x12   : > { %v283_v8 = vshrl.u32 %v4056_v5, 16  ;;  %v286_v9 = vshll.u32 %v4056_v5, 16  ;;  %v292_v10 = vshll.u32 %v4059_v6, 16  ;;  %v296_v11 = vshrl.u32 %v4059_v6, 16  ;;  %v4069_v12 = vld [vmem:[%s4050_s29 + $0x78] sm:$0xf] }
  0x13   : > { %v302_v13 = vshll.u32 %v4062_v7, 16  ;;  %v4073_v14 = vld [vmem:[%s4050_s29 + $0x7c] sm:$0xf]  ;;  %v4076_v15 = vld [vmem:[%s4050_s29 + $0x80] sm:$0x1]  ;;  %v523_v23 = vshrl.u32 %v4069_v12, 16 }
  0x14   : > { %5556 = vst [vmem:[#allocation2_spill] sm:$0xff] %v4076_v15  ;;  %v285_v17 = vrot.slane %v283_v8, 4  ;;  %v288_v18 = vrot.slane %v286_v9, 5  ;;  %v294_v19 = vrot.slane %v292_v10, 5  ;;  %v298_v20 = vrot.slane %v296_v11, 4 }
  0x15   : > { %v304_v22 = vrot.slane %v302_v13, 5  ;;  %v526_v24 = vshll.u32 %v4069_v12, 16  ;;  %v532_v25 = vshll.u32 %v4073_v14, 16  ;;  %v536_v28 = vshrl.u32 %v4073_v14, 16  ;;  %v4092_v30 = vld [vmem:[%s4050_s29 + $0xc] sm:$0xf] }
  0x16   : > { %v289_v26 = vor.u32 %v288_v18, %v285_v17  ;;  %v299_v27 = vor.u32 %v298_v20, %v294_v19  ;;  %v542_v29 = vshll.u32 %v4076_v15, 16  ;;  %v4095_v31 = vld [vmem:[%s4050_s29 + $0x10] sm:$0xf]  ;;  %v525_v33 = vrot.slane %v523_v23, 4  ;;  %v4108_v42 = vld [vmem:[%s4050_s29 + $0x14] sm:$0x1] }
  0x17   : > { %v528_v34 = vrot.slane %v526_v24, 5  ;;  %v534_v35 = vrot.slane %v532_v25, 5  ;;  %v538_v39 = vrot.slane %v536_v28, 4  ;;  %v307_v43 = vshrl.u32 %v4092_v30, 16  ;;  %v4119_v54 = vld [vmem:[%s4050_s29 + $0x84] sm:$0xf] }
  0x18   : > { %v290_v37 = vrot.slane %v289_v26, 4  ;;  %v300_v38 = vrot.slane %v299_v27, 4  ;;  %v544_v40 = vrot.slane %v542_v29, 5  ;;  %v310_v44 = vshll.u32 %v4092_v30, 16  ;;  %5559 = vst [vmem:[#allocation3_spill] sm:$0xff] %v4119_v54 }
  0x19   : > { %v529_v41 = vor.u32 %v528_v34, %v525_v33  ;;  %v316_v45 = vshll.u32 %v4095_v31, 16  ;;  %v539_v48 = vor.u32 %v538_v39, %v534_v35  ;;  %v320_v49 = vshrl.u32 %v4095_v31, 16  ;;  %v4123_v59 = vld [vmem:[%s4050_s29 + $0x88] sm:$0xf]  ;;  %v4130_v63 = vld [vmem:[%s4050_s29 + $0x8c] sm:$0x1] }
  0x1a   : > { %v295_v46 = vsel %vm4099_vm4, %v290_v37, %v294_v19  ;;  %v305_v47 = vsel %vm4099_vm4, %v300_v38, %v304_v22  ;;  %v309_v52 = vrot.slane %v307_v43, 4  ;;  %v312_v53 = vrot.slane %v310_v44, 5  ;;  %5560 = vst [vmem:[#allocation4_spill] sm:$0xff] %v4130_v63  ;;  %v4138_v9 = vld [vmem:[%s4050_s29 + $0x18] sm:$0xf] }
  0x1b   : > { %v3203_v50 = vcombine.low %v295_v46, %v305_v47  ;;  %v530_v51 = vrot.slane %v529_v41, 4  ;;  %v540_v55 = vrot.slane %v539_v48, 4  ;;  %v318_v56 = vrot.slane %v316_v45, 5  ;;  %v4147_v23 = vld [vmem:[%s4050_s29 + $0x1c] sm:$0xf] }
  0x1c   : > { %v322_v57 = vrot.slane %v320_v49, 4  ;;  %v326_v58 = vshll.u32 %v4108_v42, 16  ;;  %v313_v61 = vor.u32 %v312_v53, %v309_v52  ;;  %v547_v8 = vshrl.u32 %v4119_v54, 16  ;;  %v4154_v27 = vld [vmem:[%s4050_s29 + $0x20] sm:$0x1] }
  0x1d   : > { %3602 = vmatprep.mubr.msk.bf16.mxu0 %vm716_vm3, %v3203_v50  ;;  %v535_v60 = vsel %vm4099_vm4, %v530_v51, %v534_v35  ;;  %v545_v1 = vsel %vm4099_vm4, %v540_v55, %v544_v40  ;;  %v550_v13 = vshll.u32 %v4119_v54, 16  ;;  %v556_v17 = vshll.u32 %v4123_v59, 16  ;;  %v4161_v37 = vld [vmem:[%s4050_s29 + $0x90] sm:$0xf]  ;;  %v4169_v43 = vld [vmem:[%s5510_s1 + $0x8] sm:$0x3] }
  0x1e   : > { %v323_v2 = vor.u32 %v322_v57, %v318_v56  ;;  %v328_v3 = vrot.slane %v326_v58, 5  ;;  %v4140_v10 = vcombine.low %v535_v60, %v545_v1  ;;  %v314_v11 = vrot.slane %v313_v61, 4  ;;  %5562 = vst [vmem:[#allocation6_spill] sm:$0xff] %v4161_v37  ;;  %v4174_v48 = vld [vmem:[%s4050_s29 + $0x94] sm:$0xf] }
  0x1f   : > { %v549_v19 = vrot.slane %v547_v8, 4  ;;  %v560_v20 = vshrl.u32 %v4123_v59, 16  ;;  %v566_v22 = vshll.u32 %v4130_v63, 16  ;;  %v552_v25 = vrot.slane %v550_v13, 5  ;;  %5564 = vst [vmem:[#allocation8_spill] sm:$0xff] %v4174_v48 }
  0x20   : > { %5561 = vst [vmem:[#allocation5_spill] sm:$0xff] %v4140_v10  ;;  %v324_v18 = vrot.slane %v323_v2, 4  ;;  %3622 = vmatprep.mubr.msk.bf16.mxu1 %vm716_vm3, %v4140_v10  ;;  %v319_v24 = vsel %vm4099_vm4, %v314_v11, %v318_v56  ;;  %v558_v26 = vrot.slane %v556_v17, 5  ;;  %v331_v28 = vshrl.u32 %v4138_v9, 16  ;;  %v4182_v58 = vld [vmem:[%s4050_s29 + $0x98] sm:$0x1] }
  0x21   : > { %v562_v33 = vrot.slane %v560_v20, 4  ;;  %v568_v34 = vrot.slane %v566_v22, 5  ;;  %v334_v35 = vshll.u32 %v4138_v9, 16  ;;  %v553_v39 = vor.u32 %v552_v25, %v549_v19  ;;  %5565 = vst [vmem:[#allocation9_spill] sm:$0xff] %v4182_v58  ;;  %v4196_v17 = vld [vmem:[%s4050_s29 + $0x28] sm:$0xf] }
  0x22   : > { %v329_v29 = vsel %vm4099_vm4, %v324_v18, %v328_v3  ;;  %v333_v40 = vrot.slane %v331_v28, 4  ;;  %v340_v41 = vshll.u32 %v4147_v23, 16  ;;  %v344_v46 = vshrl.u32 %v4147_v23, 16  ;;  %v4188_v3 = vld [vmem:[%s4050_s29 + $0x24] sm:$0xf] }
  0x23   : > { %v4163_v38 = vcombine.low %v319_v24, %v329_v29  ;;  %v563_v44 = vor.u32 %v562_v33, %v558_v26  ;;  %v336_v45 = vrot.slane %v334_v35, 5  ;;  %v350_v47 = vshll.u32 %v4154_v27, 16  ;;  %v4204_v28 = vld [vmem:[%s4050_s29 + $0x2c] sm:$0x1] }
  0x24   : > { %v554_v49 = vrot.slane %v553_v39, 4  ;;  %v342_v50 = vrot.slane %v340_v41, 5  ;;  %v571_v51 = vshrl.u32 %v4161_v37, 16  ;;  %v574_v52 = vshll.u32 %v4161_v37, 16 }
  0x25   : > { %5563 = vst [vmem:[#allocation7_spill] sm:$0xff] %v4163_v38  ;;  %3603 = vmatmul.mubr.msk.bf16.vlgmr.msra.gmra.mxu0 %vm716_vm3, %v4163_v38  ;;  %v564_v53 = vrot.slane %v563_v44, 4  ;;  %v337_v55 = vor.u32 %v336_v45, %v333_v40  ;;  %v346_v56 = vrot.slane %v344_v46, 4  ;;  %v352_v57 = vrot.slane %v350_v47, 5  ;;  %v4212_v40 = vld [vmem:[%s4050_s29 + $0x9c] sm:$0xf] }
  0x26   : > { %3669 = vmatpush3.bf16.msra.mxu0 %v4053_v4  ;;  %v559_v60 = vsel %vm4099_vm4, %v554_v49, %v558_v26  ;;  %v573_v61 = vrot.slane %v571_v51, 4  ;;  %v576_v1 = vrot.slane %v574_v52, 5  ;;  %v580_v2 = vshll.u32 %v4174_v48, 16  ;;  %5567 = vst [vmem:[#allocation11_spill] sm:$0xff] %v4212_v40  ;;  %v4218_v47 = vld [vmem:[%s4050_s29 + $0xa0] sm:$0xf] }
  0x27   : > { %3948 = vmatprep.subr.msk.bf16.mxu0 %vm765_vm0, %v4169_v43  ;;  %v569_v4 = vsel %vm4099_vm4, %v564_v53, %v568_v34  ;;  %v338_v8 = vrot.slane %v337_v55, 4  ;;  %v347_v11 = vor.u32 %v346_v56, %v342_v50  ;;  %v584_v13 = vshrl.u32 %v4174_v48, 16  ;;  %5568 = vst [vmem:[#allocation12_spill] sm:$0xff] %v4218_v47  ;;  %v4359_v38 = vld [vmem:[%s4050_s29 + $0x5c] sm:$0x1] }
  0x28   : > { %v4198_v18 = vcombine.low %v559_v60, %v569_v4  ;;  %v577_v19 = vor.u32 %v576_v1, %v573_v61  ;;  %v582_v20 = vrot.slane %v580_v2, 5  ;;  %v590_v22 = vshll.u32 %v4182_v58, 16 }
  0x29   : > { %v343_v24 = vsel %vm4099_vm4, %v338_v8, %v342_v50  ;;  %v348_v25 = vrot.slane %v347_v11, 4  ;;  %v586_v26 = vrot.slane %v584_v13, 4  ;;  %v355_v29 = vshrl.u32 %v4188_v3, 16 }
  0x2a   : > { %5566 = vst [vmem:[#allocation10_spill] sm:$0xff] %v4198_v18  ;;  %3623 = vmatmul.mubr.msk.bf16.vlgmr.msra.gmra.mxu1 %vm716_vm3, %v4198_v18  ;;  %v578_v33 = vrot.slane %v577_v19, 4  ;;  %v592_v34 = vrot.slane %v590_v22, 5  ;;  %v358_v35 = vshll.u32 %v4188_v3, 16  ;;  %v364_v39 = vshll.u32 %v4196_v17, 16 }
  0x2b   : > { %v353_v41 = vsel %vm4099_vm4, %v348_v25, %v352_v57  ;;  %v587_v44 = vor.u32 %v586_v26, %v582_v20  ;;  %v357_v45 = vrot.slane %v355_v29, 4  ;;  %v368_v46 = vshrl.u32 %v4196_v17, 16  ;;  %3635 = vmatpush3.bf16.msra.mxu1 %v4079_v16  ;;  %v4229_v57 = vld [vmem:[%s4050_s29 + $0xa4] sm:$0x1]  ;;  %v4243_v19 = vld [vmem:[%s4050_s29 + $0x34] sm:$0xf] }
  0x2c   : > { %v4221_v49 = vcombine.low %v343_v24, %v353_v41  ;;  %v583_v50 = vsel %vm4099_vm4, %v578_v33, %v582_v20  ;;  %v360_v51 = vrot.slane %v358_v35, 5  ;;  %v366_v52 = vrot.slane %v364_v39, 5  ;;  %3947 = vmatprep.subr.msk.bf16.mxu1 %vm765_vm0, %v4084_v21  ;;  %5570 = vst [vmem:[#allocation14_spill] sm:$0xff] %v4229_v57  ;;  %v4238_v21 = vld [vmem:[%s4050_s29 + $0x30] sm:$0xf] }
  0x2d   : > { %v588_v53 = vrot.slane %v587_v44, 4  ;;  %v370_v55 = vrot.slane %v368_v46, 4  ;;  %v374_v56 = vshll.u32 %v4204_v28, 16  ;;  %v595_v16 = vshrl.u32 %v4212_v40, 16  ;;  %v4254_v41 = vld [vmem:[%s4050_s29 + $0x38] sm:$0x1] }
  0x2e   : > { %5569 = vst [vmem:[#allocation13_spill] sm:$0xff] %v4221_v49  ;;  %3606 = vmatprep.mubr.msk.bf16.mxu0 %vm716_vm3, %v4221_v49  ;;  %v361_v60 = vor.u32 %v360_v51, %v357_v45  ;;  %v598_v61 = vshll.u32 %v4212_v40, 16  ;;  %v604_v1 = vshll.u32 %v4218_v47, 16  ;;  %v608_v2 = vshrl.u32 %v4218_v47, 16  ;;  %v4259_v46 = vld [vmem:[%s4050_s29 + $0xa8] sm:$0xf] }
  0x2f   : > { %v593_v4 = vsel %vm4099_vm4, %v588_v53, %v592_v34  ;;  %v371_v8 = vor.u32 %v370_v55, %v366_v52  ;;  %v376_v11 = vrot.slane %v374_v56, 5  ;;  %v597_v13 = vrot.slane %v595_v16, 4  ;;  %v4264_v56 = vld [vmem:[%s4050_s29 + $0xac] sm:$0xf]  ;;  %v4419_v47 = vld [vmem:[%s4050_s29 + $0x74] sm:$0x1] }
  0x30   : > { %v4245_v20 = vcombine.low %v583_v50, %v593_v4  ;;  %v362_v22 = vrot.slane %v361_v60, 4  ;;  %v600_v24 = vrot.slane %v598_v61, 5  ;;  %v606_v25 = vrot.slane %v604_v1, 5 }
  0x31   : > { %v372_v26 = vrot.slane %v371_v8, 4  ;;  %v610_v29 = vrot.slane %v608_v2, 4  ;;  %v614_v33 = vshll.u32 %v4229_v57, 16  ;;  %v379_v35 = vshrl.u32 %v4238_v21, 16 }
  0x32   : > { %5571 = vst [vmem:[#allocation15_spill] sm:$0xff] %v4245_v20  ;;  %3626 = vmatprep.mubr.msk.bf16.mxu1 %vm716_vm3, %v4245_v20  ;;  %v367_v34 = vsel %vm4099_vm4, %v362_v22, %v366_v52  ;;  %v601_v39 = vor.u32 %v600_v24, %v597_v13  ;;  %v382_v44 = vshll.u32 %v4238_v21, 16  ;;  %v388_v45 = vshll.u32 %v4243_v19, 16  ;;  %v4276_v22 = vld [vmem:[%s4050_s29 + $0xb0] sm:$0x1] }
  0x33   : > { %v377_v50 = vsel %vm4099_vm4, %v372_v26, %v376_v11  ;;  %v611_v51 = vor.u32 %v610_v29, %v606_v25  ;;  %v616_v53 = vrot.slane %v614_v33, 5  ;;  %v381_v55 = vrot.slane %v379_v35, 4  ;;  %v4281_v29 = vld [vmem:[%s4050_s29 + $0x3c] sm:$0xf]  ;;  %v4310_v20 = vld [vmem:[%s4050_s29 + $0xb8] sm:$0xf] }
  0x34   : > { %v4266_v52 = vcombine.low %v367_v34, %v377_v50  ;;  %v602_v16 = vrot.slane %v601_v39, 4  ;;  %v384_v60 = vrot.slane %v382_v44, 5  ;;  %v390_v61 = vrot.slane %v388_v45, 5  ;;  %v4286_v44 = vld [vmem:[%s4050_s29 + $0x40] sm:$0xf] }
  0x35   : > { %v612_v1 = vrot.slane %v611_v51, 4  ;;  %v392_v2 = vshrl.u32 %v4243_v19, 16  ;;  %v398_v4 = vshll.u32 %v4254_v41, 16  ;;  %v619_v8 = vshrl.u32 %v4259_v46, 16 }
  0x36   : > { %5572 = vst [vmem:[#allocation16_spill] sm:$0xff] %v4266_v52  ;;  %3607 = vmatmul.mubr.msk.bf16.gmra.mxu0 %vm716_vm3, %v4266_v52  ;;  %v607_v11 = vsel %vm4099_vm4, %v602_v16, %v606_v25  ;;  %v385_v13 = vor.u32 %v384_v60, %v381_v55  ;;  %v622_v24 = vshll.u32 %v4259_v46, 16  ;;  %v628_v26 = vshll.u32 %v4264_v56, 16 }
  0x37   : > { %v617_v33 = vsel %vm4099_vm4, %v612_v1, %v616_v53  ;;  %v394_v35 = vrot.slane %v392_v2, 4  ;;  %v400_v34 = vrot.slane %v398_v4, 5  ;;  %v621_v39 = vrot.slane %v619_v8, 4  ;;  %v4298_v2 = vld [vmem:[%s4050_s29 + $0x44] sm:$0x1] }
  0x38   : > { %v4288_v25 = vcombine.low %v607_v11, %v617_v33  ;;  %v386_v45 = vrot.slane %v385_v13, 4  ;;  %v624_v50 = vrot.slane %v622_v24, 5  ;;  %v630_v51 = vrot.slane %v628_v26, 5  ;;  %v4303_v11 = vld [vmem:[%s4050_s29 + $0xb4] sm:$0xf] }
  0x39   : > { %v395_v55 = vor.u32 %v394_v35, %v390_v61  ;;  %v632_v16 = vshrl.u32 %v4264_v56, 16  ;;  %v638_v60 = vshll.u32 %v4276_v22, 16  ;;  %v403_v62 = vshrl.u32 %v4281_v29, 16 }
  0x3a   : > { %5573 = vst [vmem:[#allocation17_spill] sm:$0xff] %v4288_v25  ;;  %3627 = vmatmul.mubr.msk.bf16.gmra.mxu1 %vm716_vm3, %v4288_v25  ;;  %v391_v53 = vsel %vm4099_vm4, %v386_v45, %v390_v61  ;;  %v625_v1 = vor.u32 %v624_v50, %v621_v39  ;;  %v406_v4 = vshll.u32 %v4281_v29, 16  ;;  %v412_v8 = vshll.u32 %v4286_v44, 16 }
  0x3b   : > { %v396_v13 = vrot.slane %v395_v55, 4  ;;  %v634_v24 = vrot.slane %v632_v16, 4  ;;  %v640_v26 = vrot.slane %v638_v60, 5  ;;  %v405_v33 = vrot.slane %v403_v62, 4 }
  0x3c   : > { %v626_v35 = vrot.slane %v625_v1, 4  ;;  %v408_v0 = vrot.slane %v406_v4, 5  ;;  %v414_v25 = vrot.slane %v412_v8, 5  ;;  %v416_v61 = vshrl.u32 %v4286_v44, 16  ;;  %v4318_v4 = vld [vmem:[%s4050_s29 + $0xbc] sm:$0x1] }
  0x3d   : > { %v401_v39 = vsel %vm4099_vm4, %v396_v13, %v400_v34  ;;  %v635_v45 = vor.u32 %v634_v24, %v630_v51  ;;  %v422_v50 = vshll.u32 %v4298_v2, 16  ;;  %v643_v55 = vshrl.u32 %v4303_v11, 16  ;;  %v4321_v8 = vld [vmem:[%s4050_s29 + $0x48] sm:$0xf] }
  0x3e   : > { %v4313_v16 = vcombine.low %v391_v53, %v401_v39  ;;  %v631_v62 = vsel %vm4099_vm4, %v626_v35, %v630_v51  ;;  %v409_v60 = vor.u32 %v408_v0, %v405_v33  ;;  %v418_v1 = vrot.slane %v416_v61, 4 }
  0x3f   : > { %v636_v34 = vrot.slane %v635_v45, 4  ;;  %v424_v13 = vrot.slane %v422_v50, 5  ;;  %v645_v24 = vrot.slane %v643_v55, 4  ;;  %v646_v18 = vshll.u32 %v4303_v11, 16  ;;  %v4332_v45 = vld [vmem:[%s4050_s29 + $0x4c] sm:$0xf] }
  0x40   : > { %5574 = vst [vmem:[#allocation18_spill] sm:$0xff] %v4313_v16  ;;  %3610 = vmatprep.mubr.msk.bf16.mxu0 %vm716_vm3, %v4313_v16  ;;  %v410_v53 = vrot.slane %v409_v60, 4  ;;  %v419_v39 = vor.u32 %v418_v1, %v414_v25  ;;  %v652_v51 = vshll.u32 %v4310_v20, 16  ;;  %v656_v0 = vshrl.u32 %v4310_v20, 16  ;;  %v4340_v16 = vld [vmem:[%s4050_s29 + $0x50] sm:$0x1] }
  0x41   : > { %v641_v33 = vsel %vm4099_vm4, %v636_v34, %v640_v26  ;;  %v648_v35 = vrot.slane %v646_v18, 5  ;;  %v662_v61 = vshll.u32 %v4318_v4, 16  ;;  %v427_v50 = vshrl.u32 %v4321_v8, 16  ;;  %v4343_v34 = vld [vmem:[%s4050_s29 + $0x54] sm:$0xf] }
  0x42   : > { %v4335_v55 = vcombine.low %v631_v62, %v641_v33  ;;  %v415_v60 = vsel %vm4099_vm4, %v410_v53, %v414_v25  ;;  %v420_v1 = vrot.slane %v419_v39, 4  ;;  %v654_v10 = vrot.slane %v652_v51, 5 }
  0x43   : > { %v649_v52 = vor.u32 %v648_v35, %v645_v24  ;;  %v658_v49 = vrot.slane %v656_v0, 4  ;;  %v664_v26 = vrot.slane %v662_v61, 5  ;;  %v429_v18 = vrot.slane %v427_v50, 4  ;;  %v4356_v35 = vld [vmem:[%s4050_s29 + $0x58] sm:$0xf] }
  0x44   : > { %5575 = vst [vmem:[#allocation19_spill] sm:$0xff] %v4335_v55  ;;  %3630 = vmatprep.mubr.msk.bf16.mxu1 %vm716_vm3, %v4335_v55  ;;  %v425_v62 = vsel %vm4099_vm4, %v420_v1, %v424_v13  ;;  %v430_v25 = vshll.u32 %v4321_v8, 16  ;;  %v436_v53 = vshll.u32 %v4332_v45, 16  ;;  %v440_v39 = vshrl.u32 %v4332_v45, 16 }
  0x45   : > { %v4352_v51 = vcombine.low %v415_v60, %v425_v62  ;;  %v650_v24 = vrot.slane %v649_v52, 4  ;;  %v659_v0 = vor.u32 %v658_v49, %v654_v10  ;;  %v446_v33 = vshll.u32 %v4340_v16, 16 }
  0x46   : > { %v432_v61 = vrot.slane %v430_v25, 5  ;;  %v438_v50 = vrot.slane %v436_v53, 5  ;;  %v442_v55 = vrot.slane %v440_v39, 4  ;;  %v451_v13 = vshrl.u32 %v4343_v34, 16 }
  0x47   : > { %5576 = vst [vmem:[#allocation20_spill] sm:$0xff] %v4352_v51  ;;  %3611 = vmatmul.mubr.msk.bf16.gmra.mxu0 %vm716_vm3, %v4352_v51  ;;  %v655_v60 = vsel %vm4099_vm4, %v650_v24, %v654_v10  ;;  %v660_v52 = vrot.slane %v659_v0, 4  ;;  %v448_v49 = vrot.slane %v446_v33, 5  ;;  %v454_v1 = vshll.u32 %v4343_v34, 16  ;;  %v4373_v10 = vld [vmem:[%s4050_s29 + $0x60] sm:$0xf] }
  0x48   : > { %v433_v62 = vor.u32 %v432_v61, %v429_v18  ;;  %v443_v25 = vor.u32 %v442_v55, %v438_v50  ;;  %v453_v53 = vrot.slane %v451_v13, 4  ;;  %v460_v39 = vshll.u32 %v4356_v35, 16  ;;  %v4378_v55 = vld [vmem:[%s4050_s29 + $0x64] sm:$0xf] }
  0x49   : > { %v665_v57 = vsel %vm4099_vm4, %v660_v52, %v664_v26  ;;  %v456_v58 = vrot.slane %v454_v1, 5  ;;  %v464_v51 = vshrl.u32 %v4356_v35, 16  ;;  %v470_v63 = vshll.u32 %v4359_v38, 16  ;;  %v4385_v1 = vld [vmem:[%s4050_s29 + $0x68] sm:$0x1] }
  0x4a   : > { %v4375_v24 = vcombine.low %v655_v60, %v665_v57  ;;  %v434_v0 = vrot.slane %v433_v62, 4  ;;  %v444_v33 = vrot.slane %v443_v25, 4  ;;  %v462_v18 = vrot.slane %v460_v39, 5 }
  0x4b   : > { %v457_v61 = vor.u32 %v456_v58, %v453_v53  ;;  %v466_v26 = vrot.slane %v464_v51, 4  ;;  %v472_v13 = vrot.slane %v470_v63, 5  ;;  %v4382_v52 = vcombine.low %v4092_v30, %v4095_v31 }
  0x4c   : > { %5577 = vst [vmem:[#allocation21_spill] sm:$0xff] %v4375_v24  ;;  %3631 = vmatmul.mubr.msk.bf16.gmra.mxu1 %vm716_vm3, %v4375_v24  ;;  %v439_v57 = vsel %vm4099_vm4, %v434_v0, %v438_v50  ;;  %v449_v60 = vsel %vm4099_vm4, %v444_v33, %v448_v49  ;;  %v475_v58 = vshrl.u32 %v4373_v10, 16  ;;  %v478_v63 = vshll.u32 %v4373_v10, 16  ;;  %v4403_v50 = vld [vmem:[%s4050_s29 + $0x6c] sm:$0xf] }
  0x4d   : > { %v4395_v51 = vcombine.low %v439_v57, %v449_v60  ;;  %v5579_v62 = vcombine.low %v4056_v5, %v4059_v6  ;;  %v458_v25 = vrot.slane %v457_v61, 4  ;;  %v467_v53 = vor.u32 %v466_v26, %v462_v18  ;;  %v4408_v57 = vld [vmem:[%s4050_s29 + $0x70] sm:$0xf] }
  0x4e   : > { %v484_v39 = vshll.u32 %v4378_v55, 16  ;;  %v477_v0 = vrot.slane %v475_v58, 4  ;;  %v480_v49 = vrot.slane %v478_v63, 5  ;;  %v488_v33 = vshrl.u32 %v4378_v55, 16 }
  0x4f   : > { %5578 = vst [vmem:[#allocation22_spill] sm:$0xff] %v4395_v51  ;;  %3636 = vmatprep.mubr.msk.bf16.mxu1 %vm716_vm3, %v5579_v62  ;;  %v494_v24 = vshll.u32 %v4385_v1, 16  ;;  %3614 = vmatprep.mubr.msk.bf16.mxu0 %vm716_vm3, %v4395_v51  ;;  %v463_v61 = vsel %vm4099_vm4, %v458_v25, %v462_v18  ;;  %v468_v26 = vrot.slane %v467_v53, 4  ;;  %v4416_v62 = vcombine.low %v4138_v9, %v4147_v23 }
  0x50   : > { %v486_v60 = vrot.slane %v484_v39, 5  ;;  %v481_v58 = vor.u32 %v480_v49, %v477_v0  ;;  %v490_v63 = vrot.slane %v488_v33, 4  ;;  %v499_v15 = vshrl.u32 %v4403_v50, 16 }
  0x51   : > { %v496_v40 = vrot.slane %v494_v24, 5  ;;  %v473_v37 = vsel %vm4099_vm4, %v468_v26, %v472_v13  ;;  %v502_v51 = vshll.u32 %v4403_v50, 16  ;;  %v508_v18 = vshll.u32 %v4408_v57, 16  ;;  %v4433_v13 = vld [vmem:[%s5510_s1 + $0xa] sm:$0x3] }
  0x52   : > { %v512_v25 = vshrl.u32 %v4408_v57, 16  ;;  %v4427_v53 = vcombine.low %v463_v61, %v473_v37  ;;  %v482_v39 = vrot.slane %v481_v58, 4  ;;  %v491_v48 = vor.u32 %v490_v63, %v486_v60 }
  0x53   : > { %v501_v0 = vrot.slane %v499_v15, 4  ;;  %v504_v49 = vrot.slane %v502_v51, 5  ;;  %v510_v24 = vrot.slane %v508_v18, 5  ;;  %v518_v54 = vshll.u32 %v4419_v47, 16 }
  0x54   : > { %v514_v33 = vrot.slane %v512_v25, 4  ;;  %v1253_v26 = vrot.slane %v4108_v42, 5  ;;  %3615 = vmatmul.mubr.msk.bf16.gmra.mxu0 %vm716_vm3, %v4427_v53  ;;  %3637 = vmatmul.mubr.msk.bf16.vlgmr.msra.gmra.mxu1 %vm716_vm3, %v4382_v52  ;;  %v487_v15 = vsel %vm4099_vm4, %v482_v39, %v486_v60  ;;  %v492_v37 = vrot.slane %v491_v48, 4 }
  0x55   : > { %3640 = vmatprep.mubr.msk.bf16.mxu1 %vm716_vm3, %v4416_v62  ;;  %v505_v51 = vor.u32 %v504_v49, %v501_v0  ;;  %v520_v58 = vrot.slane %v518_v54, 5  ;;  %3703 = vmatpush3.bf16.msra.mxu1 %v4105_v36  ;;  %v5580_v42 = vmov 0  ;;  %v3267_v63 = vrot.slane %v4056_v5, 9 }
  0x56   : > { %v515_v61 = vor.u32 %v514_v33, %v510_v24  ;;  %v5581_v42 = vsel %vm4447_vm7, 4294967295, %v5580_v42  ;;  %v1246_v18 = vrot.slane %v4062_v7, 5  ;;  %v497_v48 = vsel %vm4099_vm4, %v492_v37, %v496_v40  ;;  %3949 = vmatprep.subr.msk.bf16.mxu1 %vm765_vm0, %v4433_v13 }
  0x57   : > { %5582 = vst [vmem:[#allocation23_spill] sm:$0xff] %v5581_v42  ;;  %v1243_v60 = vrot.slane %v4059_v6, 5  ;;  %v3268_v25 = vrot.slane %v4092_v30, 9  ;;  %v4459_v36 = vcombine.low %v487_v15, %v497_v48  ;;  %v506_v54 = vrot.slane %v505_v51, 4 }
  0x58   : > { %v516_v39 = vrot.slane %v515_v61, 4  ;;  %v5583_v0 = vrot.slane %v4095_v31, 5  ;;  %v4465_v5 = vcombine.low %v4188_v3, %v4196_v17  ;;  %v4481_v37 = vcombine.low %v4238_v21, %v4243_v19 }
  0x59   : > { %v1244_v7 = vsel %vm4447_vm7, %v3267_v63, %v1243_v60  ;;  %v1245_v6 = vrot.slane %v1243_v60, 4  ;;  %3618 = vmatprep.mubr.msk.bf16.mxu0 %vm716_vm3, %v4459_v36  ;;  %v511_v33 = vsel %vm4099_vm4, %v506_v54, %v510_v24  ;;  %v1257_v48 = vrot.slane %v4147_v23, 5 }
  0x5a   : > { %v1252_v49 = vrot.slane %v5583_v0, 4  ;;  %v5584_v30 = vmov %v5583_v0  ;;  %v521_v15 = vsel %vm4099_vm4, %v516_v39, %v520_v58  ;;  %v3269_v60 = vrot.slane %v4138_v9, 9 }
  0x5b   : > { %v1251_v40 = vsel %vm4447_vm7, %v3268_v25, %v5584_v30  ;;  %v4485_v31 = vcombine.low %v511_v33, %v521_v15  ;;  %v1247_v61 = vsel %vm4447_vm7, %v1245_v6, %v1246_v18  ;;  %v1260_v58 = vrot.slane %v4154_v27, 5 }
  0x5c   : > { %v1254_v51 = vsel %vm4447_vm7, %v1252_v49, %v1253_v26  ;;  %v3284_v24 = vcombine.low %v1244_v7, %v1247_v61  ;;  %3641 = vmatmul.mubr.msk.bf16.gmra.mxu1 %vm716_vm3, %v4465_v5  ;;  %v1259_v26 = vrot.slane %v1257_v48, 4  ;;  %v1264_v18 = vrot.slane %v4196_v17, 5 }
  0x5d   : > { %v4489_v63 = vcombine.low %v1251_v40, %v1254_v51  ;;  %3619 = vmatmul.mubr.msk.bf16.gmra.mxu0 %vm716_vm3, %v4485_v31  ;;  %3644 = vmatprep.mubr.msk.bf16.mxu1 %vm716_vm3, %v4481_v37  ;;  %v1271_v23 = vrot.slane %v4243_v19, 5  ;;  %v1258_v9 = vsel %vm4447_vm7, %v3269_v60, %v1257_v48  ;;  %v4509_v25 = vcombine.low %v4281_v29, %v4286_v44 }
  0x5e   : > { %3670 = vmatprep.mubr.msk.bf16.mxu0 %vm716_vm3, %v3284_v24  ;;  %v1261_v27 = vsel %vm4447_vm7, %v1259_v26, %v1260_v58  ;;  %v1886_v54 = vsel %vm765_vm0, %v4169_v43, 0  ;;  %v4515_v39 = vcombine.low %v4321_v8, %v4332_v45  ;;  %v3270_v17 = vrot.slane %v4188_v3, 9  ;;  %v4526_v43 = vld [vmem:[%s5510_s1 + $0xc] sm:$0x3] }
  0x5f   : > { %v1266_v19 = vrot.slane %v1264_v18, 4  ;;  %v1267_v0 = vrot.slane %v4204_v28, 5  ;;  %v4519_v49 = vcombine.low %v1258_v9, %v1261_v27  ;;  %v3271_v7 = vrot.slane %v4238_v21, 9 }
  0x60   : > { %v1273_v6 = vrot.slane %v1271_v23, 4  ;;  %v1274_v30 = vrot.slane %v4254_v41, 5  ;;  %v1278_v3 = vrot.slane %v4286_v44, 5  ;;  %v1265_v28 = vsel %vm4447_vm7, %v3270_v17, %v1264_v18 }
  0x61   : > { %v1268_v21 = vsel %vm4447_vm7, %v1266_v19, %v1267_v0  ;;  %v1285_v41 = vrot.slane %v4332_v45, 5  ;;  %v1272_v40 = vsel %vm4447_vm7, %v3271_v7, %v1271_v23  ;;  %v4550_v33 = vcombine.low %v4343_v34, %v4356_v35 }
  0x62   : > { %v1275_v44 = vsel %vm4447_vm7, %v1273_v6, %v1274_v30  ;;  %v4554_v15 = vcombine.low %v4373_v10, %v4378_v55  ;;  %v3272_v45 = vrot.slane %v4281_v29, 9  ;;  %v4557_v51 = vcombine.low %v1265_v28, %v1268_v21 }
  0x63   : > { %v1280_v61 = vrot.slane %v1278_v3, 4  ;;  %v1281_v48 = vrot.slane %v4298_v2, 5  ;;  %v4562_v24 = vcombine.low %v4259_v46, %v4264_v56  ;;  %v4564_v60 = vcombine.low %v1272_v40, %v1275_v44 }
  0x64   : > { %3645 = vmatmul.mubr.msk.bf16.gmra.mxu1 %vm716_vm3, %v4509_v25  ;;  %v3273_v58 = vrot.slane %v4321_v8, 9  ;;  %v1287_v26 = vrot.slane %v1285_v41, 4  ;;  %v1288_v18 = vrot.slane %v4340_v16, 5  ;;  %v4570_v23 = vcombine.low %v4303_v11, %v4310_v20 }
  0x65   : > { %3671 = vmatmul.mubr.msk.bf16.vlgmr.msra.gmra.mxu0 %vm716_vm3, %v4489_v63  ;;  %3648 = vmatprep.mubr.msk.bf16.mxu1 %vm716_vm3, %v4515_v39  ;;  %v1279_v29 = vsel %vm4447_vm7, %v3272_v45, %v1278_v3  ;;  %v1282_v2 = vsel %vm4447_vm7, %v1280_v61, %v1281_v48  ;;  %v1292_v9 = vrot.slane %v4356_v35, 5  ;;  %v1299_v27 = vrot.slane %v4378_v55, 5 }
  0x66   : > { %3737 = vmatpush3.bf16.msra.mxu0 %v1886_v54  ;;  %3674 = vmatprep.mubr.msk.bf16.mxu0 %vm716_vm3, %v4519_v49  ;;  %v1286_v16 = vsel %vm4447_vm7, %v3273_v58, %v1285_v41  ;;  %v1289_v8 = vsel %vm4447_vm7, %v1287_v26, %v1288_v18  ;;  %v4592_v54 = vcombine.low %v4403_v50, %v4408_v57  ;;  %v3274_v0 = vrot.slane %v4343_v34, 9  ;;  %v5586_v18 = vld [vmem:[#allocation3_spill] sm:$0xff] }
  0x67   : > { %3950 = vmatprep.subr.msk.bf16.mxu0 %vm765_vm0, %v4526_v43  ;;  %v4594_v17 = vcombine.low %v1279_v29, %v1282_v2  ;;  %v4598_v19 = vcombine.low %v4069_v12, %v4073_v14  ;;  %v1295_v7 = vrot.slane %v4359_v38, 5  ;;  %v4602_v6 = vcombine.low %v1286_v16, %v1289_v8  ;;  %v5587_v2 = vld [vmem:[#allocation8_spill] sm:$0xff]  ;;  %v5588_v16 = vld [vmem:[#allocation6_spill] sm:$0xff] }
  0x68   : > { %v3275_v35 = vrot.slane %v4373_v10, 9  ;;  %v3281_v55 = vrot.slane %v4259_v46, 9  ;;  %v1341_v30 = vrot.slane %v4264_v56, 5  ;;  %v1294_v3 = vrot.slane %v1292_v9, 4 }
  0x69   : > { %v1301_v28 = vrot.slane %v1299_v27, 4  ;;  %v1302_v21 = vrot.slane %v4385_v1, 5  ;;  %v1344_v41 = vrot.slane %v4276_v22, 5  ;;  %v3282_v38 = vrot.slane %v4303_v11, 9 }
  0x6a   : > { %v1342_v40 = vsel %vm4447_vm7, %v3281_v55, %v1341_v30  ;;  %v1343_v34 = vrot.slane %v1341_v30, 4  ;;  %v1348_v44 = vrot.slane %v4310_v20, 5  ;;  %v1351_v10 = vrot.slane %v4318_v4, 5 }
  0x6b   : > { %v1293_v20 = vsel %vm4447_vm7, %v3274_v0, %v1292_v9  ;;  %v1296_v11 = vsel %vm4447_vm7, %v1294_v3, %v1295_v7  ;;  %v1306_v4 = vrot.slane %v4408_v57, 5  ;;  %v1300_v45 = vsel %vm4447_vm7, %v3275_v35, %v1299_v27  ;;  %v5589_v7 = vld [vmem:[#allocation2_spill] sm:$0xff] }
  0x6c   : > { %3649 = vmatmul.mubr.msk.bf16.gmra.mxu1 %vm716_vm3, %v4550_v33  ;;  %v1345_v46 = vsel %vm4447_vm7, %v1343_v34, %v1344_v41  ;;  %v1349_v56 = vsel %vm4447_vm7, %v3282_v38, %v1348_v44  ;;  %v1350_v22 = vrot.slane %v1348_v44, 4  ;;  %v1303_v61 = vsel %vm4447_vm7, %v1301_v28, %v1302_v21  ;;  %v5590_v41 = vld [vmem:[#allocation12_spill] sm:$0xff] }
  0x6d   : > { %3675 = vmatmul.mubr.msk.bf16.gmra.mxu0 %vm716_vm3, %v4557_v51  ;;  %3652 = vmatprep.mubr.msk.bf16.mxu1 %vm716_vm3, %v4554_v15  ;;  %v4631_v1 = vcombine.low %v1342_v40, %v1345_v46  ;;  %v1313_v48 = vrot.slane %v4073_v14, 5  ;;  %v4644_v29 = vcombine.low %v5586_v18, %v4123_v59  ;;  %v4646_v57 = vcombine.low %v1293_v20, %v1296_v11  ;;  %v5591_v40 = vld [vmem:[#allocation11_spill] sm:$0xff]  ;;  %v5593_v11 = vld [vmem:[#allocation9_spill] sm:$0xff] }
  0x6e   : > { %3678 = vmatprep.mubr.msk.bf16.mxu0 %vm716_vm3, %v4564_v60  ;;  %v1352_v58 = vsel %vm4447_vm7, %v1350_v22, %v1351_v10  ;;  %v4650_v8 = vcombine.low %v5588_v16, %v5587_v2  ;;  %v4652_v9 = vcombine.low %v1300_v45, %v1303_v61  ;;  %v3276_v27 = vrot.slane %v4403_v50, 9 }
  0x6f   : > { %v4640_v26 = vcombine.low %v1349_v56, %v1352_v58  ;;  %v1308_v14 = vrot.slane %v1306_v4, 4  ;;  %v1309_v0 = vrot.slane %v4419_v47, 5  ;;  %v1316_v35 = vrot.slane %v5589_v7, 5 }
  0x70   : > { %v3277_v55 = vrot.slane %v4069_v12, 9  ;;  %v1315_v30 = vrot.slane %v1313_v48, 4  ;;  %v1307_v47 = vsel %vm4447_vm7, %v3276_v27, %v1306_v4  ;;  %v1320_v12 = vrot.slane %v4123_v59, 5  ;;  %v5592_v59 = vld [vmem:[#allocation4_spill] sm:$0xff] }
  0x71   : > { %5585 = vst [vmem:[#allocation24_spill] sm:$0xff] %v4640_v26  ;;  %v1310_v50 = vsel %vm4447_vm7, %v1308_v14, %v1309_v0  ;;  %v1327_v21 = vrot.slane %v5587_v2, 5  ;;  %v4678_v34 = vcombine.low %v5591_v40, %v5590_v41  ;;  %v3278_v10 = vrot.slane %v5586_v18, 9  ;;  %v5594_v0 = vld [vmem:[#allocation14_spill] sm:$0xff] }
  0x72   : > { %v1314_v3 = vsel %vm4447_vm7, %v3277_v55, %v1313_v48  ;;  %v1317_v28 = vsel %vm4447_vm7, %v1315_v30, %v1316_v35  ;;  %v4680_v38 = vcombine.low %v1307_v47, %v1310_v50  ;;  %v1322_v46 = vrot.slane %v1320_v12, 4 }
  0x73   : > { %v4682_v44 = vcombine.low %v1314_v3, %v1317_v28  ;;  %v1323_v56 = vrot.slane %v5592_v59, 5  ;;  %v3279_v22 = vrot.slane %v5588_v16, 9  ;;  %v1329_v20 = vrot.slane %v1327_v21, 4  ;;  %v5596_v3 = vld [vmem:[#allocation13_spill] sm:$0xff]  ;;  %v5597_v28 = vld [vmem:[#allocation16_spill] sm:$0xff]  ;;  %v5602_v59 = vld [vmem:[#allocation10_spill] sm:$0xff] }
  0x74   : > { %3653 = vmatmul.mubr.msk.bf16.gmra.mxu1 %vm716_vm3, %v4592_v54  ;;  %v1330_v4 = vrot.slane %v5593_v11, 5  ;;  %v1321_v45 = vsel %vm4447_vm7, %v3278_v10, %v1320_v12  ;;  %v1334_v48 = vrot.slane %v5590_v41, 5  ;;  %v3280_v27 = vrot.slane %v5591_v40, 9  ;;  %v3408_v12 = vld [vmem:[%s5510_s1 + $0x10] sm:$0x3]  ;;  %v5600_v41 = vld [vmem:[#allocation22_spill] sm:$0xff] }
  0x75   : > { %3679 = vmatmul.mubr.msk.bf16.gmra.mxu0 %vm716_vm3, %v4594_v17  ;;  %3656 = vmatprep.mubr.msk.bf16.mxu1 %vm716_vm3, %v4598_v19  ;;  %v1324_v61 = vsel %vm4447_vm7, %v1322_v46, %v1323_v56  ;;  %v1328_v58 = vsel %vm4447_vm7, %v3279_v22, %v1327_v21  ;;  %v1337_v7 = vrot.slane %v5594_v0, 5  ;;  %v2098_v47 = vsel %vm765_vm0, %v4433_v13, 0  ;;  %v5595_v13 = vld [vmem:[#allocation7_spill] sm:$0xff]  ;;  %v5599_v21 = vld [vmem:[#allocation20_spill] sm:$0xff]  ;;  %v5601_v40 = vld [vmem:[#allocation5_spill] sm:$0xff] }
  0x76   : > { %3682 = vmatprep.mubr.msk.bf16.mxu0 %vm716_vm3, %v4602_v6  ;;  %v1331_v18 = vsel %vm4447_vm7, %v1329_v20, %v1330_v4  ;;  %v4705_v2 = vcombine.low %v1321_v45, %v1324_v61  ;;  %v1336_v14 = vrot.slane %v1334_v48, 4  ;;  %v1335_v35 = vsel %vm4447_vm7, %v3280_v27, %v1334_v48  ;;  %v4790_v10 = vld [vmem:[%s4050_s29 + $0xc0] sm:$0xf]  ;;  %v4793_v46 = vld [vmem:[%s4050_s29 + $0xc4] sm:$0xf]  ;;  %v5603_v27 = vld [vmem:[#allocation15_spill] sm:$0xff] }
  0x77   : > { %v4707_v16 = vcombine.low %v1328_v58, %v1331_v18  ;;  %v2304_v50 = vsel %vm765_vm0, %v4526_v43, 0  ;;  %v5598_v43 = vld [vmem:[#allocation18_spill] sm:$0xff]  ;;  %v1854_v56 = vshrl.u32 %v4790_v10, 16  ;;  %v1857_v22 = vshll.u32 %v4790_v10, 16  ;;  %v4808_v18 = vld [vmem:[%s4050_s29 + $0xc8] sm:$0x1] }
  0x78   : > { %v1338_v55 = vsel %vm4447_vm7, %v1336_v14, %v1337_v7  ;;  %v1867_v20 = vshrl.u32 %v4793_v46, 16  ;;  %v1863_v11 = vshll.u32 %v4793_v46, 16  ;;  %v4805_v4 = vcombine.low %v4790_v10, %v4793_v46  ;;  %v5604_v14 = vld [vmem:[#allocation17_spill] sm:$0xff] }
  0x79   : > { %v4723_v30 = vcombine.low %v1335_v35, %v1338_v55  ;;  %v1856_v45 = vrot.slane %v1854_v56, 4  ;;  %v1859_v61 = vrot.slane %v1857_v22, 5  ;;  %v1873_v35 = vshll.u32 %v4808_v18, 16  ;;  %v5605_v56 = vld [vmem:[#allocation19_spill] sm:$0xff]  ;;  %v5606_v22 = vld [vmem:[#allocation21_spill] sm:$0xff] }
  0x7a   : > { %v1865_v48 = vrot.slane %v1863_v11, 5  ;;  %v1869_v58 = vrot.slane %v1867_v20, 4  ;;  %v2744_v11 = vsel %vm765_vm0, %v3408_v12, 0 }
  0x7b   : > { %v1860_v0 = vor.u32 %v1859_v61, %v1856_v45 }
  0x7c   : > { %3657 = vmatmul.mubr.msk.bf16.gmra.mxu1 %vm716_vm3, %v4644_v29  ;;  %v1870_v7 = vor.u32 %v1869_v58, %v1865_v48 }
  0x7d   : > { %3683 = vmatmul.mubr.msk.bf16.gmra.mxu0 %vm716_vm3, %v4646_v57  ;;  %3660 = vmatprep.mubr.msk.bf16.mxu1 %vm716_vm3, %v4650_v8  ;;  %v1861_v55 = vrot.slane %v1860_v0, 4 }
  0x7e   : > { %3686 = vmatprep.mubr.msk.bf16.mxu0 %vm716_vm3, %v4652_v9 }
  0x84   : > { %3661 = vmatmul.mubr.msk.bf16.gmra.mxu1 %vm716_vm3, %v4678_v34 }
  0x85   : > { %3687 = vmatmul.mubr.msk.bf16.gmra.mxu0 %vm716_vm3, %v4680_v38  ;;  %3664 = vmatprep.mubr.msk.bf16.mxu1 %vm716_vm3, %v4562_v24 }
  0x86   : > { %3690 = vmatprep.mubr.msk.bf16.mxu0 %vm716_vm3, %v4682_v44 }
  0x8c   : > { %3665 = vmatmul.mubr.msk.bf16.gmra.mxu1 %vm716_vm3, %v4570_v23 }
  0x8d   : > { %3691 = vmatmul.mubr.msk.bf16.gmra.mxu0 %vm716_vm3, %v4705_v2  ;;  %3704 = vmatprep.mubr.msk.bf16.mxu1 %vm716_vm3, %v4382_v52  ;;  %v3389_v52 = vld [vmem:[%s5510_s1 + $0xe] sm:$0x3] }
  0x8e   : > { %3694 = vmatprep.mubr.msk.bf16.mxu0 %vm716_vm3, %v4707_v16 }
  0x94   : > { %3705 = vmatmul.mubr.msk.bf16.vlgmr.msra.gmra.mxu1 %vm716_vm3, %v4416_v62 }
  0x95   : > { %3695 = vmatmul.mubr.msk.bf16.gmra.mxu0 %vm716_vm3, %v4723_v30  ;;  %3708 = vmatprep.mubr.msk.bf16.mxu1 %vm716_vm3, %v4465_v5 }
  0x96   : > { %3698 = vmatprep.mubr.msk.bf16.mxu0 %vm716_vm3, %v4631_v1  ;;  %3771 = vmatpush3.bf16.msra.mxu1 %v2098_v47  ;;  %v1871_v47 = vrot.slane %v1870_v7, 4 }
  0x97   : > { %3951 = vmatprep.subr.msk.bf16.mxu1 %vm765_vm0, %v3389_v52 }
  0x9c   : > { %3709 = vmatmul.mubr.msk.bf16.gmra.mxu1 %vm716_vm3, %v4481_v37 }
  0x9d   : > { %3699 = vmatmul.mubr.msk.bf16.gmra.mxu0 %vm716_vm3, %v4640_v26  ;;  %3712 = vmatprep.mubr.msk.bf16.mxu1 %vm716_vm3, %v4509_v25 }
  0x9e   : > { %3738 = vmatprep.mubr.msk.bf16.mxu0 %vm716_vm3, %v5595_v13  ;;  %v1875_v13 = vrot.slane %v1873_v35, 5  ;;  %v3352_v35 = vrot.slane %v4790_v10, 9 }
  0xa0   : > { %v1876_v20 = vsel %vm4099_vm4, %v1871_v47, %v1875_v13  ;;  %v2087_v47 = vrot.slane %v4808_v18, 5 }
  0xa4   : > { %3713 = vmatmul.mubr.msk.bf16.gmra.mxu1 %vm716_vm3, %v4515_v39 }
  0xa5   : > { %3739 = vmatmul.mubr.msk.bf16.vlgmr.msra.gmra.mxu0 %vm716_vm3, %v5596_v3  ;;  %3716 = vmatprep.mubr.msk.bf16.mxu1 %vm716_vm3, %v4550_v33 }
  0xa6   : > { %3805 = vmatpush3.bf16.msra.mxu0 %v2304_v50  ;;  %3742 = vmatprep.mubr.msk.bf16.mxu0 %vm716_vm3, %v5597_v28  ;;  %v2532_v50 = vsel %vm765_vm0, %v3389_v52, 0 }
  0xa7   : > { %3952 = vmatprep.subr.msk.bf16.mxu0 %vm765_vm0, %v3408_v12 }
  0xac   : > { %3717 = vmatmul.mubr.msk.bf16.gmra.mxu1 %vm716_vm3, %v4554_v15 }
  0xad   : > { %3743 = vmatmul.mubr.msk.bf16.gmra.mxu0 %vm716_vm3, %v5598_v43  ;;  %3720 = vmatprep.mubr.msk.bf16.mxu1 %vm716_vm3, %v4592_v54 }
  0xae   : > { %3746 = vmatprep.mubr.msk.bf16.mxu0 %vm716_vm3, %v5599_v21 }
  0xb4   : > { %3721 = vmatmul.mubr.msk.bf16.gmra.mxu1 %vm716_vm3, %v4598_v19 }
  0xb5   : > { %3747 = vmatmul.mubr.msk.bf16.gmra.mxu0 %vm716_vm3, %v5600_v41  ;;  %3724 = vmatprep.mubr.msk.bf16.mxu1 %vm716_vm3, %v4644_v29 }
  0xb6   : > { %3750 = vmatprep.mubr.msk.bf16.mxu0 %vm716_vm3, %v4427_v53 }
  0xbc   : > { %3725 = vmatmul.mubr.msk.bf16.gmra.mxu1 %vm716_vm3, %v4650_v8 }
  0xbd   : > { %3751 = vmatmul.mubr.msk.bf16.gmra.mxu0 %vm716_vm3, %v4459_v36  ;;  %3728 = vmatprep.mubr.msk.bf16.mxu1 %vm716_vm3, %v4678_v34 }
  0xbe   : > { %3754 = vmatprep.mubr.msk.bf16.mxu0 %vm716_vm3, %v4485_v31 }
  0xc4   : > { %3729 = vmatmul.mubr.msk.bf16.gmra.mxu1 %vm716_vm3, %v4562_v24 }
  0xc5   : > { %3755 = vmatmul.mubr.msk.bf16.gmra.mxu0 %vm716_vm3, %v5601_v40  ;;  %3732 = vmatprep.mubr.msk.bf16.mxu1 %vm716_vm3, %v4570_v23 }
  0xc6   : > { %3758 = vmatprep.mubr.msk.bf16.mxu0 %vm716_vm3, %v5602_v59 }
  0xcc   : > { %3733 = vmatmul.mubr.msk.bf16.gmra.mxu1 %vm716_vm3, %v4805_v4 }
  0xcd   : > { %3759 = vmatmul.mubr.msk.bf16.gmra.mxu0 %vm716_vm3, %v5603_v27  ;;  %3772 = vmatprep.mubr.msk.bf16.mxu1 %vm716_vm3, %v4489_v63  ;;  %v1866_v63 = vsel %vm4099_vm4, %v1861_v55, %v1865_v48 }
  0xce   : > { %3762 = vmatprep.mubr.msk.bf16.mxu0 %vm716_vm3, %v5604_v14  ;;  %v4832_v52 = vcombine.low %v1866_v63, %v1876_v20 }
  0xd4   : > { %3773 = vmatmul.mubr.msk.bf16.vlgmr.msra.gmra.mxu1 %vm716_vm3, %v4519_v49 }
  0xd5   : > { %3763 = vmatmul.mubr.msk.bf16.gmra.mxu0 %vm716_vm3, %v5605_v56  ;;  %3776 = vmatprep.mubr.msk.bf16.mxu1 %vm716_vm3, %v4557_v51 }
  0xd6   : > { %3766 = vmatprep.mubr.msk.bf16.mxu0 %vm716_vm3, %v5606_v22  ;;  %3839 = vmatpush3.bf16.msra.mxu1 %v2532_v50 }
  0xdc   : > { %3777 = vmatmul.mubr.msk.bf16.gmra.mxu1 %vm716_vm3, %v4564_v60 }
  0xdd   : > { %3767 = vmatmul.mubr.msk.bf16.gmra.mxu0 %vm716_vm3, %v4832_v52  ;;  %3780 = vmatprep.mubr.msk.bf16.mxu1 %vm716_vm3, %v4594_v17 }
  0xde   : > { %3806 = vmatprep.mubr.msk.bf16.mxu0 %vm716_vm3, %v4416_v62 }
  0xe4   : > { %3781 = vmatmul.mubr.msk.bf16.gmra.mxu1 %vm716_vm3, %v4602_v6 }
  0xe5   : > { %3807 = vmatmul.mubr.msk.bf16.vlgmr.msra.gmra.mxu0 %vm716_vm3, %v4465_v5  ;;  %3784 = vmatprep.mubr.msk.bf16.mxu1 %vm716_vm3, %v4646_v57  ;;  %v3604_v45 = vpop.f32.mrf.mxu0 }
  0xe6   : > { %3873 = vmatpush3.bf16.msra.mxu0 %v2744_v11  ;;  %3810 = vmatprep.mubr.msk.bf16.mxu0 %vm716_vm3, %v4481_v37 }
  0xe7   : > { %v803_v61 = vpop.f32.mrf.mxu0 }
  0xe9   : > { %v3605_v5 = vpop.f32.mrf.mxu0 }
  0xea   : > { %v4855_v62 = vpop.f32.mrf.mxu1 }
  0xeb   : > { %v806_v37 = vpop.f32.mrf.mxu0 }
  0xec   : > { %3785 = vmatmul.mubr.msk.bf16.gmra.mxu1 %vm716_vm3, %v4652_v9  ;;  %v4861_v12 = vpop.f32.mrf.mxu1 }
  0xed   : > { %3811 = vmatmul.mubr.msk.bf16.gmra.mxu0 %vm716_vm3, %v4509_v25  ;;  %3788 = vmatprep.mubr.msk.bf16.mxu1 %vm716_vm3, %v4680_v38 }
  0xee   : > { %3814 = vmatprep.mubr.msk.bf16.mxu0 %vm716_vm3, %v4515_v39  ;;  %v4867_v48 = vpop.f32.mrf.mxu1 }
  0xf0   : > { %v4873_v39 = vpop.f32.mrf.mxu1 }
  0xf4   : > { %3789 = vmatmul.mubr.msk.bf16.gmra.mxu1 %vm716_vm3, %v4682_v44 }
  0xf5   : > { %3815 = vmatmul.mubr.msk.bf16.gmra.mxu0 %vm716_vm3, %v4550_v33  ;;  %3792 = vmatprep.mubr.msk.bf16.mxu1 %vm716_vm3, %v4705_v2  ;;  %v2084_v33 = vrot.slane %v4793_v46, 5 }
  0xf6   : > { %3818 = vmatprep.mubr.msk.bf16.mxu0 %vm716_vm3, %v4554_v15  ;;  %v3608_v25 = vpop.f32.mrf.mxu0 }
  0xf7   : > { %v2086_v55 = vrot.slane %v2084_v33, 4 }
  0xf8   : > { %v819_v58 = vpop.f32.mrf.mxu0 }
  0xf9   : > { %v2088_v10 = vsel %vm4447_vm7, %v2086_v55, %v2087_v47 }
  0xfa   : > { %v4879_v0 = vpop.f32.mrf.mxu1  ;;  %v3609_v15 = vpop.f32.mrf.mxu0 }
  0xfb   : > { %5607 = vst [vmem:[#allocation3_spill] sm:$0xff] %v4879_v0 }
  0xfc   : > { %3793 = vmatmul.mubr.msk.bf16.gmra.mxu1 %vm716_vm3, %v4707_v16  ;;  %v4886_v7 = vpop.f32.mrf.mxu1  ;;  %v822_v13 = vpop.f32.mrf.mxu0 }
  0xfd   : > { %3819 = vmatmul.mubr.msk.bf16.gmra.mxu0 %vm716_vm3, %v4592_v54  ;;  %3796 = vmatprep.mubr.msk.bf16.mxu1 %vm716_vm3, %v4723_v30  ;;  %5608 = vst [vmem:[#allocation8_spill] sm:$0xff] %v4886_v7 }
  0xfe   : > { %3822 = vmatprep.mubr.msk.bf16.mxu0 %vm716_vm3, %v4598_v19  ;;  %v4894_v54 = vpop.f32.mrf.mxu1  ;;  %v2085_v19 = vsel %vm4447_vm7, %v3352_v35, %v2084_v33 }
  0xff   : > { %5609 = vst [vmem:[#allocation6_spill] sm:$0xff] %v4894_v54  ;;  %v4906_v50 = vcombine.low %v2085_v19, %v2088_v10 }
 0x100   : > { %v4904_v18 = vpop.f32.mrf.mxu1 }
 0x101   : > { %5610 = vst [vmem:[#allocation2_spill] sm:$0xff] %v4906_v50 }
 0x104   : > { %3797 = vmatmul.mubr.msk.bf16.gmra.mxu1 %vm716_vm3, %v4631_v1 }
 0x105   : > { %3823 = vmatmul.mubr.msk.bf16.gmra.mxu0 %vm716_vm3, %v4644_v29  ;;  %3800 = vmatprep.mubr.msk.bf16.mxu1 %vm716_vm3, %v4640_v26 }
 0x106   : > { %3826 = vmatprep.mubr.msk.bf16.mxu0 %vm716_vm3, %v4650_v8 }
 0x107   : > { %v3612_v46 = vpop.f32.mrf.mxu0 }
 0x109   : > { %v835_v29 = vpop.f32.mrf.mxu0 }
 0x10b   : > { %v3613_v8 = vpop.f32.mrf.mxu0 }
 0x10c   : > { %v4908_v63 = vpop.f32.mrf.mxu1  ;;  %3801 = vmatmul.mubr.msk.bf16.gmra.mxu1 %vm716_vm3, %v4906_v50 }
 0x10d   : > { %3827 = vmatmul.mubr.msk.bf16.gmra.mxu0 %vm716_vm3, %v4678_v34  ;;  %3840 = vmatprep.mubr.msk.bf16.mxu1 %vm716_vm3, %v5596_v3  ;;  %v838_v33 = vpop.f32.mrf.mxu0  ;;  %v4936_v3 = vld [vmem:[%s4050_s29 + $0xd0] sm:$0xf] }
 0x10e   : > { %3830 = vmatprep.mubr.msk.bf16.mxu0 %vm716_vm3, %v4562_v24  ;;  %v4918_v20 = vpop.f32.mrf.mxu1  ;;  %v4933_v24 = vld [vmem:[%s4050_s29 + $0xcc] sm:$0xf] }
 0x110   : > { %v4920_v11 = vpop.f32.mrf.mxu1 }
 0x112   : > { %v4922_v35 = vpop.f32.mrf.mxu1 }
 0x113   : > { %5611 = vst [vmem:[#allocation12_spill] sm:$0xff] %v4922_v35 }
 0x114   : > { %v3616_v55 = vpop.f32.mrf.mxu0  ;;  %v3638_v47 = vpop.f32.mrf.mxu1  ;;  %3841 = vmatmul.mubr.msk.bf16.vlgmr.msra.gmra.mxu1 %vm716_vm3, %v5597_v28 }
 0x115   : > { %3831 = vmatmul.mubr.msk.bf16.gmra.mxu0 %vm716_vm3, %v4570_v23  ;;  %v1104_v34 = vadd.f32 %v3638_v47, %v3604_v45  ;;  %3844 = vmatprep.mubr.msk.bf16.mxu1 %vm716_vm3, %v5598_v43  ;;  %v3372_v23 = vcombine.low %v4933_v24, %v4936_v3 }
 0x116   : > { %3834 = vmatprep.mubr.msk.bf16.mxu0 %vm716_vm3, %v4805_v4  ;;  %v851_v19 = vpop.f32.mrf.mxu0  ;;  %v1095_v10 = vpop.f32.mrf.mxu1 }
 0x117   : > { %v1096_v54 = vadd.f32 %v1095_v10, %v803_v61 }
 0x118   : > { %v3617_v50 = vpop.f32.mrf.mxu0  ;;  %v3639_v7 = vpop.f32.mrf.mxu1 }
 0x119   : > { %v1107_v28 = vadd.f32 %v3639_v7, %v3605_v5 }
 0x11a   : > { %v854_v45 = vpop.f32.mrf.mxu0  ;;  %v1098_v47 = vpop.f32.mrf.mxu1 }
 0x11b   : > { %v1099_v42 = vadd.f32 %v1098_v47, %v806_v37 }
 0x11c   : > { %v3642_v26 = vpop.f32.mrf.mxu1  ;;  %3845 = vmatmul.mubr.msk.bf16.gmra.mxu1 %vm716_vm3, %v5599_v21 }
 0x11d   : > { %v4940_v4 = vpop.f32.mrf.mxu0  ;;  %3835 = vmatmul.mubr.msk.bf16.gmra.mxu0 %vm716_vm3, %v3372_v23  ;;  %v1120_v43 = vadd.f32 %v3642_v26, %v3608_v25  ;;  %3848 = vmatprep.mubr.msk.bf16.mxu1 %vm716_vm3, %v5600_v41 }
 0x11e   : > { %3874 = vmatprep.mubr.msk.bf16.mxu0 %vm716_vm3, %v4519_v49  ;;  %v1111_v5 = vpop.f32.mrf.mxu1 }
 0x11f   : > { %v4949_v61 = vpop.f32.mrf.mxu0  ;;  %v1112_v7 = vadd.f32 %v1111_v5, %v819_v58 }
 0x120   : > { %v3643_v10 = vpop.f32.mrf.mxu1 }
 0x121   : > { %v4951_v37 = vpop.f32.mrf.mxu0  ;;  %v1123_v47 = vadd.f32 %v3643_v10, %v3609_v15 }
 0x122   : > { %v1114_v23 = vpop.f32.mrf.mxu1 }
 0x123   : > { %v4953_v35 = vpop.f32.mrf.mxu0  ;;  %v1115_v0 = vadd.f32 %v1114_v23, %v822_v13 }
 0x124   : > { %v3646_v21 = vpop.f32.mrf.mxu1  ;;  %3849 = vmatmul.mubr.msk.bf16.gmra.mxu1 %vm716_vm3, %v4427_v53 }
 0x125   : > { %v3672_v26 = vpop.f32.mrf.mxu0  ;;  %3875 = vmatmul.mubr.msk.bf16.vlgmr.msra.gmra.mxu0 %vm716_vm3, %v4557_v51  ;;  %v1136_v49 = vadd.f32 %v3646_v21, %v3612_v46  ;;  %3852 = vmatprep.mubr.msk.bf16.mxu1 %vm716_vm3, %v4459_v36 }
 0x126   : > { %v4959_v41 = vadd.f32 %v3672_v26, %v1104_v34  ;;  %3878 = vmatprep.mubr.msk.bf16.mxu0 %vm716_vm3, %v4564_v60  ;;  %v1127_v25 = vpop.f32.mrf.mxu1 }
 0x127   : > { %v1488_v58 = vpop.f32.mrf.mxu0  ;;  %v1128_v15 = vadd.f32 %v1127_v25, %v835_v29 }
 0x128   : > { %v4965_v13 = vadd.f32 %v1488_v58, %v1096_v54  ;;  %v3647_v5 = vpop.f32.mrf.mxu1 }
 0x129   : > { %v3673_v10 = vpop.f32.mrf.mxu0  ;;  %v1139_v53 = vadd.f32 %v3647_v5, %v3613_v8 }
 0x12a   : > { %v4967_v23 = vadd.f32 %v3673_v10, %v1107_v28  ;;  %v1130_v51 = vpop.f32.mrf.mxu1  ;;  %v2503_v10 = vshll.u32 %v4933_v24, 16 }
 0x12b   : > { %v1491_v46 = vpop.f32.mrf.mxu0  ;;  %v1131_v34 = vadd.f32 %v1130_v51, %v838_v33 }
 0x12c   : > { %v4969_v21 = vadd.f32 %v1491_v46, %v1099_v42  ;;  %v3650_v26 = vpop.f32.mrf.mxu1  ;;  %3853 = vmatmul.mubr.msk.bf16.gmra.mxu1 %vm716_vm3, %v4485_v31 }
 0x12d   : > { %v3676_v36 = vpop.f32.mrf.mxu0  ;;  %3879 = vmatmul.mubr.msk.bf16.gmra.mxu0 %vm716_vm3, %v4594_v17  ;;  %v1152_v60 = vadd.f32 %v3650_v26, %v3616_v55  ;;  %3856 = vmatprep.mubr.msk.bf16.mxu1 %vm716_vm3, %v5601_v40  ;;  %v2500_v40 = vshrl.u32 %v4933_v24, 16 }
 0x12e   : > { %v4975_v54 = vadd.f32 %v3676_v36, %v1120_v43  ;;  %3882 = vmatprep.mubr.msk.bf16.mxu0 %vm716_vm3, %v4602_v6  ;;  %v1143_v29 = vpop.f32.mrf.mxu1  ;;  %v2505_v36 = vrot.slane %v2503_v10, 5 }
 0x12f   : > { %v1504_v42 = vpop.f32.mrf.mxu0  ;;  %v1144_v8 = vadd.f32 %v1143_v29, %v851_v19  ;;  %v2502_v26 = vrot.slane %v2500_v40, 4 }
 0x130   : > { %v4981_v33 = vadd.f32 %v1504_v42, %v1112_v7  ;;  %v3651_v28 = vpop.f32.mrf.mxu1 }
 0x131   : > { %v3677_v25 = vpop.f32.mrf.mxu0  ;;  %v1155_v31 = vadd.f32 %v3651_v28, %v3617_v50  ;;  %v2513_v50 = vshrl.u32 %v4936_v3, 16 }
 0x132   : > { %v4983_v58 = vadd.f32 %v3677_v25, %v1123_v47  ;;  %v1146_v17 = vpop.f32.mrf.mxu1  ;;  %v5008_v25 = vld [vmem:[%s4050_s29 + $0xd4] sm:$0x1] }
 0x133   : > { %v1507_v55 = vpop.f32.mrf.mxu0  ;;  %v1147_v43 = vadd.f32 %v1146_v17, %v854_v45 }
 0x134   : > { %v4985_v5 = vadd.f32 %v1507_v55, %v1115_v0  ;;  %v3654_v6 = vpop.f32.mrf.mxu1  ;;  %3857 = vmatmul.mubr.msk.bf16.gmra.mxu1 %vm716_vm3, %v5602_v59  ;;  %v2509_v0 = vshll.u32 %v4936_v3, 16 }
 0x135   : > { %v3680_v51 = vpop.f32.mrf.mxu0  ;;  %3883 = vmatmul.mubr.msk.bf16.gmra.mxu0 %vm716_vm3, %v4646_v57  ;;  %v1168_v19 = vadd.f32 %v3654_v6, %v4940_v4  ;;  %3860 = vmatprep.mubr.msk.bf16.mxu1 %vm716_vm3, %v5603_v27  ;;  %v2515_v27 = vrot.slane %v2513_v50, 4 }
 0x136   : > { %v4995_v7 = vadd.f32 %v3680_v51, %v1136_v49  ;;  %3886 = vmatprep.mubr.msk.bf16.mxu0 %vm716_vm3, %v4652_v9  ;;  %v1159_v45 = vpop.f32.mrf.mxu1  ;;  %v2511_v29 = vrot.slane %v2509_v0, 5 }
 0x137   : > { %v1520_v59 = vpop.f32.mrf.mxu0 }
 0x138   : > { %v5002_v47 = vadd.f32 %v1520_v59, %v1128_v15  ;;  %v3655_v57 = vpop.f32.mrf.mxu1 }
 0x139   : > { %v3681_v46 = vpop.f32.mrf.mxu0  ;;  %v1171_v4 = vadd.f32 %v3655_v57, %v4951_v37  ;;  %v2506_v37 = vor.u32 %v2505_v36, %v2502_v26 }
 0x13a   : > { %v5005_v49 = vadd.f32 %v3681_v46, %v1139_v53  ;;  %v1162_v42 = vpop.f32.mrf.mxu1 }
 0x13b   : > { %v1523_v28 = vpop.f32.mrf.mxu0  ;;  %v1163_v9 = vadd.f32 %v1162_v42, %v4953_v35  ;;  %v2516_v35 = vor.u32 %v2515_v27, %v2511_v29  ;;  %v2507_v50 = vrot.slane %v2506_v37, 4  ;;  %v2730_v37 = vrot.slane %v4936_v3, 5 }
 0x13c   : > { %v5011_v17 = vadd.f32 %v1523_v28, %v1131_v34  ;;  %v3658_v15 = vpop.f32.mrf.mxu1  ;;  %3861 = vmatmul.mubr.msk.bf16.gmra.mxu1 %vm716_vm3, %v5604_v14  ;;  %v2519_v34 = vshll.u32 %v5008_v25, 16  ;;  %v3407_v3 = vrot.slane %v4933_v24, 9  ;;  %v5614_v24 = vld [vmem:[#allocation24_spill] sm:$0xff] }
 0x13d   : > { %v3684_v55 = vpop.f32.mrf.mxu0  ;;  %3887 = vmatmul.mubr.msk.bf16.gmra.mxu0 %vm716_vm3, %v4680_v38  ;;  %3864 = vmatprep.mubr.msk.bf16.mxu1 %vm716_vm3, %v5605_v56 }
 0x13e   : > { %v5017_v53 = vadd.f32 %v3684_v55, %v1152_v60  ;;  %3890 = vmatprep.mubr.msk.bf16.mxu0 %vm716_vm3, %v4682_v44  ;;  %v1175_v40 = vpop.f32.mrf.mxu1  ;;  %v2517_v60 = vrot.slane %v2516_v35, 4  ;;  %v2521_v0 = vrot.slane %v2519_v34, 5 }
 0x13f   : > { %v1536_v10 = vpop.f32.mrf.mxu0 }
 0x140   : > { %v5024_v6 = vadd.f32 %v1536_v10, %v1144_v8  ;;  %v3659_v14 = vpop.f32.mrf.mxu1  ;;  %v2512_v8 = vsel %vm4099_vm4, %v2507_v50, %v2511_v29 }
 0x141   : > { %v3685_v51 = vpop.f32.mrf.mxu0 }
 0x142   : > { %v5026_v38 = vadd.f32 %v3685_v51, %v1155_v31  ;;  %v1178_v59 = vpop.f32.mrf.mxu1  ;;  %v1160_v31 = vadd.f32 %v1159_v45, %v4949_v61  ;;  %v1184_v45 = vadd.f32 %v3658_v15, %v4855_v62 }
 0x143   : > { %v1539_v57 = vpop.f32.mrf.mxu0 }
 0x144   : > { %v5028_v56 = vadd.f32 %v1539_v57, %v1147_v43  ;;  %v3662_v46 = vpop.f32.mrf.mxu1  ;;  %3865 = vmatmul.mubr.msk.bf16.gmra.mxu1 %vm716_vm3, %v5606_v22  ;;  %v2522_v43 = vsel %vm4099_vm4, %v2517_v60, %v2521_v0 }
 0x145   : > { %v3688_v44 = vpop.f32.mrf.mxu0  ;;  %3891 = vmatmul.mubr.msk.bf16.gmra.mxu0 %vm716_vm3, %v4705_v2  ;;  %3868 = vmatprep.mubr.msk.bf16.mxu1 %vm716_vm3, %v4832_v52  ;;  %v3390_v29 = vcombine.low %v2512_v8, %v2522_v43 }
 0x146   : > { %v5037_v26 = vadd.f32 %v3688_v44, %v1168_v19  ;;  %3894 = vmatprep.mubr.msk.bf16.mxu0 %vm716_vm3, %v4707_v16  ;;  %v1191_v22 = vpop.f32.mrf.mxu1 }
 0x147   : > { %v1552_v36 = vpop.f32.mrf.mxu0 }
 0x148   : > { %v5045_v27 = vadd.f32 %v1552_v36, %v1160_v31  ;;  %v3663_v2 = vpop.f32.mrf.mxu1 }
 0x149   : > { %v3689_v42 = vpop.f32.mrf.mxu0 }
 0x14a   : > { %v5047_v28 = vadd.f32 %v3689_v42, %v1171_v4  ;;  %v1194_v61 = vpop.f32.mrf.mxu1  ;;  %v1176_v4 = vadd.f32 %v1175_v40, %v4861_v12  ;;  %v2732_v12 = vrot.slane %v2730_v37, 4  ;;  %v5617_v42 = vld [vmem:[#allocation2_spill] sm:$0xff] }
 0x14b   : > { %v1555_v19 = vpop.f32.mrf.mxu0  ;;  %v1195_v52 = vadd.f32 %v1194_v61, %v4904_v18 }
 0x14c   : > { %v5051_v55 = vadd.f32 %v1555_v19, %v1163_v9  ;;  %v3666_v16 = vpop.f32.mrf.mxu1  ;;  %3869 = vmatmul.mubr.msk.bf16.gmra.mxu1 %vm716_vm3, %v3390_v29  ;;  %v1187_v9 = vadd.f32 %v3659_v14, %v4867_v48  ;;  %v5612_v48 = vld [vmem:[#allocation3_spill] sm:$0xff]  ;;  %v5618_v19 = vld [vmem:[#allocation6_spill] sm:$0xff] }
 0x14d   : > { %v3692_v32 = vpop.f32.mrf.mxu0  ;;  %3895 = vmatmul.mubr.msk.bf16.gmra.mxu0 %vm716_vm3, %v4723_v30  ;;  %v1216_v35 = vadd.f32 %v3666_v16, %v4908_v63  ;;  %v1179_v63 = vadd.f32 %v1178_v59, %v4873_v39  ;;  %v1200_v14 = vadd.f32 %v3662_v46, %v5612_v48  ;;  %v5616_v59 = vld [vmem:[#allocation8_spill] sm:$0xff] }
 0x14e   : > { %v5059_v34 = vadd.f32 %v3692_v32, %v1184_v45  ;;  %3898 = vmatprep.mubr.msk.bf16.mxu0 %vm716_vm3, %v4631_v1  ;;  %v1207_v62 = vpop.f32.mrf.mxu1  ;;  %v2733_v1 = vrot.slane %v5008_v25, 5  ;;  %v1192_v43 = vadd.f32 %v1191_v22, %v5616_v59  ;;  %v1203_v45 = vadd.f32 %v3663_v2, %v5618_v19 }
 0x14f   : > { %v1568_v18 = vpop.f32.mrf.mxu0  ;;  %v1208_v15 = vadd.f32 %v1207_v62, %v4918_v20  ;;  %v5613_v20 = vld [vmem:[#allocation12_spill] sm:$0xff] }
 0x150   : > { %v5065_v10 = vadd.f32 %v1568_v18, %v1176_v4  ;;  %v3667_v30 = vpop.f32.mrf.mxu1  ;;  %v2734_v46 = vsel %vm4447_vm7, %v2732_v12, %v2733_v1 }
 0x151   : > { %v3693_v51 = vpop.f32.mrf.mxu0  ;;  %v1219_v40 = vadd.f32 %v3667_v30, %v4920_v11  ;;  %v2731_v11 = vsel %vm4447_vm7, %v3407_v3, %v2730_v37 }
 0x152   : > { %v5070_v50 = vadd.f32 %v3693_v51, %v1187_v9  ;;  %v1210_v60 = vpop.f32.mrf.mxu1  ;;  %v3409_v4 = vcombine.low %v2731_v11, %v2734_v46 }
 0x153   : > { %v1571_v0 = vpop.f32.mrf.mxu0  ;;  %v1211_v57 = vadd.f32 %v1210_v60, %v5613_v20 }
 0x154   : > { %v5075_v44 = vadd.f32 %v1571_v0, %v1179_v63  ;;  %v3706_v31 = vpop.f32.mrf.mxu1 }
 0x155   : > { %v3696_v8 = vpop.f32.mrf.mxu0  ;;  %3899 = vmatmul.mubr.msk.bf16.gmra.mxu0 %vm716_vm3, %v5614_v24  ;;  %v1823_v25 = vadd.f32 %v3706_v31, %v4959_v41 }
 0x156   : > { %v5082_v36 = vadd.f32 %v3696_v8, %v1200_v14  ;;  %3902 = vmatprep.mubr.msk.bf16.mxu0 %vm716_vm3, %v5617_v42  ;;  %v1694_v61 = vpop.f32.mrf.mxu1 }
 0x157   : > { %v1584_v29 = vpop.f32.mrf.mxu0  ;;  %v1821_v32 = vadd.f32 %v1694_v61, %v4965_v13 }
 0x158   : > { %v5090_v16 = vadd.f32 %v1584_v29, %v1192_v43  ;;  %v3707_v22 = vpop.f32.mrf.mxu1 }
 0x159   : > { %v3697_v37 = vpop.f32.mrf.mxu0  ;;  %v1824_v41 = vadd.f32 %v3707_v22, %v4967_v23 }
 0x15a   : > { %v5093_v62 = vadd.f32 %v3697_v37, %v1203_v45  ;;  %v1697_v9 = vpop.f32.mrf.mxu1 }
 0x15b   : > { %v1587_v18 = vpop.f32.mrf.mxu0  ;;  %v1822_v51 = vadd.f32 %v1697_v9, %v4969_v21 }
 0x15c   : > { %v5096_v30 = vadd.f32 %v1587_v18, %v1195_v52  ;;  %v3710_v12 = vpop.f32.mrf.mxu1 }
 0x15d   : > { %v3700_v3 = vpop.f32.mrf.mxu0  ;;  %3903 = vmatmul.mubr.msk.bf16.gmra.mxu0 %vm716_vm3, %v3409_v4  ;;  %v1827_v13 = vadd.f32 %v3710_v12, %v4975_v54 }
 0x15e   : > { %v5100_v2 = vadd.f32 %v3700_v3, %v1216_v35  ;;  %v1710_v1 = vpop.f32.mrf.mxu1 }
 0x15f   : > { %v1600_v63 = vpop.f32.mrf.mxu0  ;;  %v1825_v23 = vadd.f32 %v1710_v1, %v4981_v33 }
 0x160   : > { %v5103_v60 = vadd.f32 %v1600_v63, %v1208_v15  ;;  %v3711_v48 = vpop.f32.mrf.mxu1 }
 0x161   : > { %v3701_v0 = vpop.f32.mrf.mxu0  ;;  %v1828_v21 = vadd.f32 %v3711_v48, %v4983_v58 }
 0x162   : > { %v5106_v52 = vadd.f32 %v3701_v0, %v1219_v40  ;;  %v1713_v20 = vpop.f32.mrf.mxu1 }
 0x163   : > { %v1603_v14 = vpop.f32.mrf.mxu0  ;;  %v1826_v35 = vadd.f32 %v1713_v20, %v4985_v5 }
 0x164   : > { %v5109_v8 = vadd.f32 %v1603_v14, %v1211_v57  ;;  %v3714_v31 = vpop.f32.mrf.mxu1 }
 0x165   : > { %v3740_v54 = vpop.f32.mrf.mxu0  ;;  %v1831_v24 = vadd.f32 %v3714_v31, %v4995_v7 }
 0x166   : > { %v5113_v15 = vadd.f32 %v3740_v54, %v1823_v25  ;;  %v1726_v39 = vpop.f32.mrf.mxu1 }
 0x167   : > { %v1922_v33 = vpop.f32.mrf.mxu0  ;;  %v1829_v11 = vadd.f32 %v1726_v39, %v5002_v47 }
 0x168   : > { %v5116_v40 = vadd.f32 %v1922_v33, %v1821_v32  ;;  %v3715_v59 = vpop.f32.mrf.mxu1 }
 0x169   : > { %v3741_v58 = vpop.f32.mrf.mxu0  ;;  %v1832_v43 = vadd.f32 %v3715_v59, %v5005_v49 }
 0x16a   : > { %v5119_v57 = vadd.f32 %v3741_v58, %v1824_v41  ;;  %v1729_v42 = vpop.f32.mrf.mxu1 }
 0x16b   : > { %v1925_v5 = vpop.f32.mrf.mxu0  ;;  %v1830_v46 = vadd.f32 %v1729_v42, %v5011_v17 }
 0x16c   : > { %v5122_v29 = vadd.f32 %v1925_v5, %v1822_v51  ;;  %v3718_v7 = vpop.f32.mrf.mxu1 }
 0x16d   : > { %v3744_v25 = vpop.f32.mrf.mxu0  ;;  %v1835_v61 = vadd.f32 %v3718_v7, %v5017_v53 }
 0x16e   : > { %v5125_v19 = vadd.f32 %v3744_v25, %v1827_v13  ;;  %v1742_v47 = vpop.f32.mrf.mxu1  ;;  %v3990_v25 = vmov 0.0  }
 0x16f   : > { %v1938_v45 = vpop.f32.mrf.mxu0  ;;  %v1833_v32 = vadd.f32 %v1742_v47, %v5024_v6  ;;  %3906 = vmatprep.subr.mxu1 %v3990_v25  ;;  %3938 = vmatprep.mubr.msk.f32.mxu1 %vm3991_vm8, %v3990_v25 }
 0x170   : > { %v5128_v37 = vadd.f32 %v1938_v45, %v1825_v23  ;;  %v3719_v49 = vpop.f32.mrf.mxu1 }
 0x171   : > { %v3745_v22 = vpop.f32.mrf.mxu0  ;;  %v1836_v4 = vadd.f32 %v3719_v49, %v5026_v38  ;;  %v3062_v49 = vld [vmem:[%s5512_s3 + $0x70] sm:$0xff] }
 0x172   : > { %v5131_v41 = vadd.f32 %v3745_v22, %v1828_v21  ;;  %v1745_v17 = vpop.f32.mrf.mxu1 }
 0x173   : > { %v1941_v18 = vpop.f32.mrf.mxu0  ;;  %v1834_v9 = vadd.f32 %v1745_v17, %v5028_v56 }
 0x174   : > { %v5134_v51 = vadd.f32 %v1941_v18, %v1826_v35  ;;  %v3722_v53 = vpop.f32.mrf.mxu1 }
 0x175   : > { %v3748_v3 = vpop.f32.mrf.mxu0  ;;  %v1839_v12 = vadd.f32 %v3722_v53, %v5037_v26 }
 0x176   : > { %v5137_v13 = vadd.f32 %v3748_v3, %v1831_v24  ;;  %v1758_v6 = vpop.f32.mrf.mxu1 }
 0x177   : > { %v1954_v63 = vpop.f32.mrf.mxu0  ;;  %v1837_v1 = vadd.f32 %v1758_v6, %v5045_v27  ;;  %v3061_v6 = vld [vmem:[%s5512_s3 + $0x68] sm:$0xff] }
 0x178   : > { %v5140_v23 = vadd.f32 %v1954_v63, %v1829_v11  ;;  %v3723_v38 = vpop.f32.mrf.mxu1 }
 0x179   : > { %v3749_v0 = vpop.f32.mrf.mxu0  ;;  %v1840_v48 = vadd.f32 %v3723_v38, %v5047_v28 }
 0x17a   : > { %v5143_v21 = vadd.f32 %v3749_v0, %v1832_v43  ;;  %v1761_v56 = vpop.f32.mrf.mxu1 }
 0x17b   : > { %v1957_v14 = vpop.f32.mrf.mxu0  ;;  %v1838_v20 = vadd.f32 %v1761_v56, %v5051_v55 }
 0x17c   : > { %v5146_v35 = vadd.f32 %v1957_v14, %v1830_v46  ;;  %v3726_v26 = vpop.f32.mrf.mxu1  ;;  %v3060_v14 = vld [vmem:[%s5512_s3 + $0x60] sm:$0xff] }
 0x17d   : > { %v3752_v31 = vpop.f32.mrf.mxu0  ;;  %v1843_v54 = vadd.f32 %v3726_v26, %v5059_v34  ;;  %v3063_v34 = vld [vmem:[%s5512_s3 + $0x78] sm:$0xff] }
 0x17e   : > { %v5149_v24 = vadd.f32 %v3752_v31, %v1835_v61  ;;  %v1774_v27 = vpop.f32.mrf.mxu1  ;;  %3907 = vmatpush3.msra.mxu1 %v3063_v34  ;;  %v3058_v34 = vld [vmem:[%s5512_s3 + $0x50] sm:$0xff] }
 0x17f   : > { %v1970_v39 = vpop.f32.mrf.mxu0  ;;  %v1841_v33 = vadd.f32 %v1774_v27, %v5065_v10  ;;  %3908 = vmatprep.subr.mxu1 %v3990_v25 }
 0x180   : > { %v5152_v11 = vadd.f32 %v1970_v39, %v1833_v32  ;;  %v3727_v28 = vpop.f32.mrf.mxu1  ;;  %3909 = vmatpush3.msra.mxu1 %v3062_v49 }
 0x181   : > { %v3753_v59 = vpop.f32.mrf.mxu0  ;;  %v1844_v58 = vadd.f32 %v3727_v28, %v5070_v50  ;;  %3910 = vmatprep.subr.mxu1 %v3990_v25 }
 0x182   : > { %v5155_v43 = vadd.f32 %v3753_v59, %v1836_v4  ;;  %v1777_v55 = vpop.f32.mrf.mxu1  ;;  %3911 = vmatpush3.msra.mxu1 %v3061_v6 }
 0x183   : > { %v1973_v42 = vpop.f32.mrf.mxu0  ;;  %v1842_v5 = vadd.f32 %v1777_v55, %v5075_v44  ;;  %3912 = vmatprep.subr.mxu1 %v3990_v25 }
 0x184   : > { %v5158_v46 = vadd.f32 %v1973_v42, %v1834_v9  ;;  %v3730_v7 = vpop.f32.mrf.mxu1  ;;  %3913 = vmatpush3.msra.mxu1 %v3060_v14 }
 0x185   : > { %v3756_v10 = vpop.f32.mrf.mxu0  ;;  %v1847_v61 = vadd.f32 %v3730_v7, %v5082_v36  ;;  %3914 = vmatprep.subr.mxu1 %v3990_v25 }
 0x186   : > { %v5165_v50 = vadd.f32 %v3756_v10, %v1839_v12  ;;  %v1790_v47 = vpop.f32.mrf.mxu1 }
 0x187   : > { %v1986_v45 = vpop.f32.mrf.mxu0  ;;  %v1845_v44 = vadd.f32 %v1790_v47, %v5090_v16 }
 0x188   : > { %v5169_v32 = vadd.f32 %v1986_v45, %v1837_v1  ;;  %v3731_v22 = vpop.f32.mrf.mxu1 }
 0x189   : > { %v3757_v4 = vpop.f32.mrf.mxu0  ;;  %v1848_v36 = vadd.f32 %v3731_v22, %v5093_v62 }
 0x18a   : > { %v5175_v17 = vadd.f32 %v3757_v4, %v1840_v48  ;;  %v1793_v18 = vpop.f32.mrf.mxu1 }
 0x18b   : > { %v1989_v9 = vpop.f32.mrf.mxu0  ;;  %v1846_v53 = vadd.f32 %v1793_v18, %v5096_v30 }
 0x18c   : > { %v5179_v16 = vadd.f32 %v1989_v9, %v1838_v20  ;;  %v3734_v3 = vpop.f32.mrf.mxu1 }
 0x18d   : > { %v3760_v12 = vpop.f32.mrf.mxu0  ;;  %v1851_v63 = vadd.f32 %v3734_v3, %v5100_v2 }
 0x18e   : > { %v5185_v1 = vadd.f32 %v3760_v12, %v1843_v54  ;;  %v1806_v62 = vpop.f32.mrf.mxu1 }
 0x18f   : > { %v2002_v38 = vpop.f32.mrf.mxu0  ;;  %v1849_v0 = vadd.f32 %v1806_v62, %v5103_v60 }
 0x190   : > { %v5189_v30 = vadd.f32 %v2002_v38, %v1841_v33  ;;  %v3735_v48 = vpop.f32.mrf.mxu1  ;;  %v3059_v33 = vld [vmem:[%s5512_s3 + $0x58] sm:$0xff] }
 0x191   : > { %v3761_v56 = vpop.f32.mrf.mxu0  ;;  %v1852_v20 = vadd.f32 %v3735_v48, %v5106_v52  ;;  %3915 = vmatpush3.msra.mxu1 %v3059_v33 }
 0x192   : > { %v5195_v2 = vadd.f32 %v3761_v56, %v1844_v58  ;;  %v1809_v26 = vpop.f32.mrf.mxu1  ;;  %3916 = vmatprep.subr.mxu1 %v3990_v25 }
 0x193   : > { %v2005_v31 = vpop.f32.mrf.mxu0  ;;  %v1850_v54 = vadd.f32 %v1809_v26, %v5109_v8  ;;  %3917 = vmatpush3.msra.mxu1 %v3058_v34 }
 0x194   : > { %v5199_v60 = vadd.f32 %v2005_v31, %v1842_v5  ;;  %v3774_v39 = vpop.f32.mrf.mxu1  ;;  %3918 = vmatprep.subr.mxu1 %v3990_v25 }
 0x195   : > { %v3764_v27 = vpop.f32.mrf.mxu0  ;;  %v2263_v52 = vadd.f32 %v3774_v39, %v5113_v15 }
 0x196   : > { %5619 = vst [vmem:[#allocation11_spill] sm:$0xff] %v5199_v60  ;;  %v5204_v28 = vadd.f32 %v3764_v27, %v1847_v61  ;;  %v2134_v58 = vpop.f32.mrf.mxu1 }
 0x197   : > { %v2018_v59 = vpop.f32.mrf.mxu0  ;;  %v2261_v8 = vadd.f32 %v2134_v58, %v5116_v40 }
 0x198   : > { %v5208_v55 = vadd.f32 %v2018_v59, %v1845_v44  ;;  %v3775_v5 = vpop.f32.mrf.mxu1  ;;  %v3057_v44 = vld [vmem:[%s5512_s3 + $0x48] sm:$0xff] }
 0x199   : > { %v3765_v42 = vpop.f32.mrf.mxu0  ;;  %v2264_v10 = vadd.f32 %v3775_v5, %v5119_v57  ;;  %3919 = vmatpush3.msra.mxu1 %v3057_v44 }
 0x19a   : > { %5620 = vst [vmem:[#allocation4_spill] sm:$0xff] %v5208_v55  ;;  %v5214_v7 = vadd.f32 %v3765_v42, %v1848_v36  ;;  %v5217_v61 = vpop.f32.mrf.mxu1  ;;  %3920 = vmatprep.subr.mxu1 %v3990_v25 }
 0x19b   : > { %v2021_v15 = vpop.f32.mrf.mxu0 }
 0x19c   : > { %v5220_v47 = vadd.f32 %v2021_v15, %v1846_v53  ;;  %v3778_v40 = vpop.f32.mrf.mxu1  ;;  %v3056_v53 = vld [vmem:[%s5512_s3 + $0x40] sm:$0xff] }
 0x19d   : > { %v3768_v45 = vpop.f32.mrf.mxu0  ;;  %v2267_v22 = vadd.f32 %v3778_v40, %v5125_v19  ;;  %3921 = vmatpush3.msra.mxu1 %v3056_v53 }
 0x19e   : > { %5621 = vst [vmem:[#allocation9_spill] sm:$0xff] %v5220_v47  ;;  %v5225_v49 = vadd.f32 %v3768_v45, %v1851_v63  ;;  %v5228_v4 = vpop.f32.mrf.mxu1  ;;  %3922 = vmatprep.subr.mxu1 %v3990_v25 }
 0x19f   : > { %v2034_v57 = vpop.f32.mrf.mxu0 }
 0x1a0   : > { %v5231_v36 = vadd.f32 %v2034_v57, %v1849_v0  ;;  %v3779_v9 = vpop.f32.mrf.mxu1  ;;  %v3055_v0 = vld [vmem:[%s5512_s3 + $0x38] sm:$0xff]  ;;  %v3052_v57 = vld [vmem:[%s5512_s3 + $0x20] sm:$0xff] }
 0x1a1   : > { %v3769_v18 = vpop.f32.mrf.mxu0  ;;  %v2268_v12 = vadd.f32 %v3779_v9, %v5131_v41  ;;  %3923 = vmatpush3.msra.mxu1 %v3055_v0 }
 0x1a2   : > { %5622 = vst [vmem:[#allocation14_spill] sm:$0xff] %v5231_v36  ;;  %v5236_v3 = vadd.f32 %v3769_v18, %v1852_v20  ;;  %v5239_v6 = vpop.f32.mrf.mxu1  ;;  %3924 = vmatprep.subr.mxu1 %v3990_v25 }
 0x1a3   : > { %v2037_v19 = vpop.f32.mrf.mxu0 }
 0x1a4   : > { %v5242_v63 = vadd.f32 %v2037_v19, %v1850_v54  ;;  %v3782_v62 = vpop.f32.mrf.mxu1  ;;  %v3054_v54 = vld [vmem:[%s5512_s3 + $0x30] sm:$0xff] }
 0x1a5   : > { %v3808_v38 = vpop.f32.mrf.mxu0  ;;  %v2271_v48 = vadd.f32 %v3782_v62, %v5137_v13  ;;  %3925 = vmatpush3.msra.mxu1 %v3054_v54 }
 0x1a6   : > { %5623 = vst [vmem:[#allocation7_spill] sm:$0xff] %v5242_v63  ;;  %v5248_v56 = vadd.f32 %v3808_v38, %v2263_v52  ;;  %v5250_v41 = vpop.f32.mrf.mxu1  ;;  %3926 = vmatprep.subr.mxu1 %v3990_v25 }
 0x1a7   : > { %v2340_v14 = vpop.f32.mrf.mxu0 }
 0x1a8   : > { %v5253_v20 = vadd.f32 %v2340_v14, %v2261_v8  ;;  %v3783_v26 = vpop.f32.mrf.mxu1 }
 0x1a9   : > { %v3809_v31 = vpop.f32.mrf.mxu0  ;;  %v2272_v27 = vadd.f32 %v3783_v26, %v5143_v21  ;;  %v3049_v26 = vld [vmem:[%s5512_s3 + $0x8] sm:$0xff] }
 0x1aa   : > { %v5259_v39 = vadd.f32 %v3809_v31, %v2264_v10  ;;  %v5261_v13 = vpop.f32.mrf.mxu1 }
 0x1ab   : > { %v5263_v33 = vpop.f32.mrf.mxu0 }
 0x1ac   : > { %v3786_v52 = vpop.f32.mrf.mxu1 }
 0x1ad   : > { %v3812_v59 = vpop.f32.mrf.mxu0  ;;  %v2275_v58 = vadd.f32 %v3786_v52, %v5149_v24  ;;  %v3053_v24 = vld [vmem:[%s5512_s3 + $0x28] sm:$0xff] }
 0x1ae   : > { %v5267_v8 = vadd.f32 %v3812_v59, %v2267_v22  ;;  %v5269_v42 = vpop.f32.mrf.mxu1  ;;  %3927 = vmatpush3.msra.mxu1 %v3053_v24 }
 0x1af   : > { %v5271_v5 = vpop.f32.mrf.mxu0  ;;  %3928 = vmatprep.subr.mxu1 %v3990_v25 }
 0x1b0   : > { %v3787_v21 = vpop.f32.mrf.mxu1  ;;  %3929 = vmatpush3.msra.mxu1 %v3052_v57 }
 0x1b1   : > { %v3813_v34 = vpop.f32.mrf.mxu0  ;;  %v2276_v10 = vadd.f32 %v3787_v21, %v5155_v43  ;;  %3930 = vmatprep.subr.mxu1 %v3990_v25 }
 0x1b2   : > { %v5274_v15 = vadd.f32 %v3813_v34, %v2268_v12  ;;  %v5276_v45 = vpop.f32.mrf.mxu1  ;;  %v3051_v12 = vld [vmem:[%s5512_s3 + $0x18] sm:$0xff] }
 0x1b3   : > { %v5278_v40 = vpop.f32.mrf.mxu0  ;;  %3931 = vmatpush3.msra.mxu1 %v3051_v12 }
 0x1b4   : > { %v3790_v44 = vpop.f32.mrf.mxu1  ;;  %3932 = vmatprep.subr.mxu1 %v3990_v25 }
 0x1b5   : > { %v3816_v22 = vpop.f32.mrf.mxu0  ;;  %v2279_v43 = vadd.f32 %v3790_v44, %v5165_v50  ;;  %v3050_v50 = vld [vmem:[%s5512_s3 + $0x10] sm:$0xff] }
 0x1b6   : > { %v5288_v18 = vadd.f32 %v3816_v22, %v2271_v48  ;;  %v5290_v9 = vpop.f32.mrf.mxu1  ;;  %3933 = vmatpush3.msra.mxu1 %v3050_v50 }
 0x1b7   : > { %v5292_v53 = vpop.f32.mrf.mxu0  ;;  %3934 = vmatprep.subr.mxu1 %v3990_v25 }
 0x1b8   : > { %v3791_v19 = vpop.f32.mrf.mxu1  ;;  %3935 = vmatpush3.msra.mxu1 %v3049_v26 }
 0x1b9   : > { %v3817_v62 = vpop.f32.mrf.mxu0  ;;  %v2280_v38 = vadd.f32 %v3791_v19, %v5175_v17  ;;  %3936 = vmatprep.subr.mxu1 %v3990_v25  ;;  %v3048_v17 = vld [vmem:[%s5512_s3] sm:$0xff] }
 0x1ba   : > { %v5303_v0 = vadd.f32 %v3817_v62, %v2272_v27  ;;  %v5305_v48 = vpop.f32.mrf.mxu1  ;;  %3937 = vmatpush3.msra.mxu1 %v3048_v17 }
 0x1bb   : > { %v5307_v14 = vpop.f32.mrf.mxu0 }
 0x1bc   : > { %v3794_v31 = vpop.f32.mrf.mxu1 }
 0x1bd   : > { %v3820_v54 = vpop.f32.mrf.mxu0  ;;  %v2283_v27 = vadd.f32 %v3794_v31, %v5185_v1 }
 0x1be   : > { %v5318_v52 = vadd.f32 %v3820_v54, %v2275_v58  ;;  %v5321_v59 = vpop.f32.mrf.mxu1 }
 0x1bf   : > { %v5323_v21 = vpop.f32.mrf.mxu0 }
 0x1c0   : > { %v3795_v34 = vpop.f32.mrf.mxu1 }
 0x1c1   : > { %v3821_v24 = vpop.f32.mrf.mxu0  ;;  %v2284_v44 = vadd.f32 %v3795_v34, %v5195_v2 }
 0x1c2   : > { %v5326_v22 = vadd.f32 %v3821_v24, %v2276_v10  ;;  %v5328_v57 = vpop.f32.mrf.mxu1 }
 0x1c3   : > { %5624 = vst [vmem:[#allocation13_spill] sm:$0xff] %v5328_v57  ;;  %v5330_v12 = vpop.f32.mrf.mxu0 }
 0x1c4   : > { %v3798_v1 = vpop.f32.mrf.mxu1 }
 0x1c5   : > { %v3824_v58 = vpop.f32.mrf.mxu0  ;;  %v2287_v19 = vadd.f32 %v3798_v1, %v5204_v28 }
 0x1c6   : > { %v5333_v62 = vadd.f32 %v3824_v58, %v2279_v43  ;;  %v5335_v25 = vpop.f32.mrf.mxu1 }
 0x1c7   : > { %5625 = vst [vmem:[#allocation16_spill] sm:$0xff] %v5335_v25  ;;  %v5337_v50 = vpop.f32.mrf.mxu0 }
 0x1c8   : > { %v3799_v26 = vpop.f32.mrf.mxu1 }
 0x1c9   : > { %v3825_v31 = vpop.f32.mrf.mxu0  ;;  %v2288_v2 = vadd.f32 %v3799_v26, %v5214_v7 }
 0x1ca   : > { %v5340_v10 = vadd.f32 %v3825_v31, %v2280_v38  ;;  %v5342_v54 = vpop.f32.mrf.mxu1 }
 0x1cb   : > { %5626 = vst [vmem:[#allocation18_spill] sm:$0xff] %v5342_v54  ;;  %v5344_v17 = vpop.f32.mrf.mxu0 }
 0x1cc   : > { %v3802_v34 = vpop.f32.mrf.mxu1 }
 0x1cd   : > { %v3828_v24 = vpop.f32.mrf.mxu0  ;;  %v2291_v28 = vadd.f32 %v3802_v34, %v5225_v49 }
 0x1ce   : > { %v5347_v43 = vadd.f32 %v3828_v24, %v2283_v27  ;;  %v5349_v1 = vpop.f32.mrf.mxu1 }
 0x1cf   : > { %5628 = vst [vmem:[#allocation22_spill] sm:$0xff] %v5349_v1  ;;  %v5351_v58 = vpop.f32.mrf.mxu0 }
 0x1d0   : > { %5627 = vst [vmem:[#allocation20_spill] sm:$0xff] %v5347_v43  ;;  %v3803_v63 = vpop.f32.mrf.mxu1 }
 0x1d1   : > { %v3829_v36 = vpop.f32.mrf.mxu0  ;;  %v2292_v7 = vadd.f32 %v3803_v63, %v5236_v3 }
 0x1d2   : > { %v5354_v38 = vadd.f32 %v3829_v36, %v2284_v44  ;;  %v5356_v26 = vpop.f32.mrf.mxu1 }
 0x1d3   : > { %5630 = vst [vmem:[#allocation10_spill] sm:$0xff] %v5356_v26  ;;  %v5358_v31 = vpop.f32.mrf.mxu0 }
 0x1d4   : > { %5629 = vst [vmem:[#allocation5_spill] sm:$0xff] %v5354_v38  ;;  %5631 = vst [vmem:[#allocation15_spill] sm:$0xff] %v5358_v31  ;;  %v3842_v47 = vpop.f32.mrf.mxu1 }
 0x1d5   : > { %v3832_v54 = vpop.f32.mrf.mxu0 }
 0x1d6   : > { %v5360_v25 = vadd.f32 %v3832_v54, %v2287_v19  ;;  %v2568_v27 = vpop.f32.mrf.mxu1 }
 0x1d7   : > { %v5362_v49 = vpop.f32.mrf.mxu0 }
 0x1d8   : > { %5632 = vst [vmem:[#allocation17_spill] sm:$0xff] %v5360_v25  ;;  %5633 = vst [vmem:[#allocation19_spill] sm:$0xff] %v5362_v49  ;;  %v3843_v24 = vpop.f32.mrf.mxu1 }
 0x1d9   : > { %v3833_v34 = vpop.f32.mrf.mxu0 }
 0x1da   : > { %v5364_v1 = vadd.f32 %v3833_v34, %v2288_v2  ;;  %v2571_v3 = vpop.f32.mrf.mxu1  ;;  %v2262_v34 = vadd.f32 %v5217_v61, %v5122_v29  ;;  %v5389_v29 = vld [vmem:[%s5511_s2] ss:$0 sm:$0xff] }
 0x1db   : > { %v5366_v55 = vpop.f32.mrf.mxu0 }
 0x1dc   : > { %5634 = vst [vmem:[#allocation21_spill] sm:$0xff] %v5364_v1  ;;  %5635 = vst [vmem:[#allocation3_spill] sm:$0xff] %v5366_v55  ;;  %v3846_v63 = vpop.f32.mrf.mxu1  ;;  %v2695_v1 = vadd.f32 %v2568_v27, %v5253_v20 }
 0x1dd   : > { %v3836_v36 = vpop.f32.mrf.mxu0 }
 0x1de   : > { %v5368_v44 = vadd.f32 %v3836_v36, %v2291_v28  ;;  %v2584_v38 = vpop.f32.mrf.mxu1 }
 0x1df   : > { %v5370_v26 = vpop.f32.mrf.mxu0 }
 0x1e0   : > { %5636 = vst [vmem:[#allocation12_spill] sm:$0xff] %v5368_v44  ;;  %5637 = vst [vmem:[#allocation24_spill] sm:$0xff] %v5370_v26  ;;  %v3847_v19 = vpop.f32.mrf.mxu1  ;;  %v2468_v44 = vadd.f32 %v5263_v33, %v2262_v34  ;;  %v2697_v26 = vadd.f32 %v3842_v47, %v5248_v56 }
 0x1e1   : > { %v3837_v43 = vpop.f32.mrf.mxu0 }
 0x1e2   : > { %v5372_v54 = vadd.f32 %v3837_v43, %v2292_v7  ;;  %v2587_v49 = vpop.f32.mrf.mxu1  ;;  %v2696_v57 = vadd.f32 %v2571_v3, %v2468_v44  ;;  %v2701_v44 = vadd.f32 %v3846_v63, %v5267_v8  ;;  %v2269_v8 = vadd.f32 %v5250_v41, %v5140_v23 }
 0x1e3   : > { %v5374_v25 = vpop.f32.mrf.mxu0 }
 0x1e4   : > { %5638 = vst [vmem:[#allocation23_spill] sm:$0xff] %v5372_v54  ;;  %5639 = vst [vmem:[#allocation8_spill] sm:$0xff] %v5374_v25  ;;  %v5376_v31 = vpop.f32.mrf.mxu1  ;;  %v2265_v54 = vadd.f32 %v5228_v4, %v5128_v37  ;;  %v2698_v25 = vadd.f32 %v3843_v24, %v5259_v39  ;;  %v2266_v37 = vadd.f32 %v5239_v6, %v5134_v51 }
 0x1e5   : > { %v3876_v2 = vpop.f32.mrf.mxu0  ;;  %v2702_v51 = vadd.f32 %v3847_v19, %v5274_v15  ;;  %v2270_v15 = vadd.f32 %v5261_v13, %v5146_v35 }
 0x1e6   : > { %v2600_v28 = vpop.f32.mrf.mxu1  ;;  %v2909_v60 = vadd.f32 %v3876_v2, %v2697_v26  ;;  %v2471_v33 = vadd.f32 %v5271_v5, %v2265_v54  ;;  %v2472_v3 = vadd.f32 %v5278_v40, %v2266_v37 }
 0x1e7   : > { %v2780_v36 = vpop.f32.mrf.mxu0  ;;  %v2476_v41 = vadd.f32 %v5307_v14, %v2270_v15 }
 0x1e8   : > { %v2907_v55 = vadd.f32 %v2780_v36, %v2695_v1  ;;  %v3851_v43 = vpop.f32.mrf.mxu1  ;;  %v2699_v26 = vadd.f32 %v2584_v38, %v2471_v33  ;;  %v2948_v27 = vadd.f32 %v5389_v29, %v2909_v60  ;;  %v2700_v6 = vadd.f32 %v2587_v49, %v2472_v3 }
 0x1e9   : > { %v3877_v7 = vpop.f32.mrf.mxu0  ;;  %v2475_v49 = vadd.f32 %v5292_v53, %v2269_v8 }
 0x1ea   : > { %v2603_v61 = vpop.f32.mrf.mxu1  ;;  %v2946_v47 = vadd.f32 %v5389_v29, %v2907_v55  ;;  %v2910_v56 = vadd.f32 %v3877_v7, %v2698_v25  ;;  %v2980_v60 = vmax.f32 %v2948_v27, 0.0 }
 0x1eb   : > { %v2783_v20 = vpop.f32.mrf.mxu0  ;;  %v2704_v14 = vadd.f32 %v2603_v61, %v2476_v41  ;;  %v2277_v41 = vadd.f32 %v5290_v9, %v5169_v32  ;;  %v2278_v9 = vadd.f32 %v5305_v48, %v5179_v16  ;;  %v2281_v48 = vadd.f32 %v5321_v59, %v5189_v30  ;;  %v5641_v30 = vld [vmem:[#allocation13_spill] sm:$0xff] }
 0x1ec   : > { %v2908_v1 = vadd.f32 %v2783_v20, %v2696_v57  ;;  %v5395_v4 = vpop.f32.mrf.mxu1  ;;  %v2978_v55 = vmax.f32 %v2946_v47, 0.0  ;;  %v2949_v57 = vadd.f32 %v5389_v29, %v2910_v56 }
 0x1ed   : > { %v3880_v39 = vpop.f32.mrf.mxu0 }
 0x1ee   : > { %v2947_v24 = vadd.f32 %v5389_v29, %v2908_v1  ;;  %v2616_v5 = vpop.f32.mrf.mxu1  ;;  %v2913_v7 = vadd.f32 %v3880_v39, %v2701_v44  ;;  %v2981_v33 = vmax.f32 %v2949_v57, 0.0  ;;  %v2706_v57 = vadd.f32 %v3851_v43, %v5303_v0 }
 0x1ef   : > { %v2796_v54 = vpop.f32.mrf.mxu0 }
 0x1f0   : > { %v2979_v25 = vmax.f32 %v2947_v24, 0.0  ;;  %v2911_v2 = vadd.f32 %v2796_v54, %v2699_v26  ;;  %v5403_v34 = vpop.f32.mrf.mxu1  ;;  %v2952_v39 = vadd.f32 %v5389_v29, %v2913_v7  ;;  %v2703_v24 = vadd.f32 %v2600_v28, %v2475_v49 }
 0x1f1   : > { %v3881_v38 = vpop.f32.mrf.mxu0  ;;  %v2705_v54 = vadd.f32 %v5376_v31, %v5288_v18 }
 0x1f2   : > { %v3010_v36 = vadd.f32 %v2979_v25, %v2978_v55  ;;  %v2950_v40 = vadd.f32 %v5389_v29, %v2911_v2  ;;  %v2619_v63 = vpop.f32.mrf.mxu1  ;;  %v2914_v56 = vadd.f32 %v3881_v38, %v2702_v51  ;;  %v2273_v55 = vadd.f32 %v5269_v42, %v5152_v11 }
 0x1f3   : > { %v2799_v20 = vpop.f32.mrf.mxu0  ;;  %v2984_v28 = vmax.f32 %v2952_v39, 0.0 }
 0x1f4   : > { %v3011_v47 = vadd.f32 %v3010_v36, %v2980_v60  ;;  %v2912_v1 = vadd.f32 %v2799_v20, %v2700_v6  ;;  %v5411_v19 = vpop.f32.mrf.mxu1  ;;  %v2982_v26 = vmax.f32 %v2950_v40, 0.0  ;;  %v2953_v13 = vadd.f32 %v5389_v29, %v2914_v56 }
 0x1f5   : > { %v3884_v37 = vpop.f32.mrf.mxu0  ;;  %v2479_v60 = vadd.f32 %v5323_v21, %v2273_v55  ;;  %v2274_v21 = vadd.f32 %v5276_v45, %v5158_v46 }
 0x1f6   : > { %v3012_v27 = vadd.f32 %v3011_v47, %v2981_v33  ;;  %v2951_v23 = vadd.f32 %v5389_v29, %v2912_v1  ;;  %v2632_v3 = vpop.f32.mrf.mxu1  ;;  %v2917_v38 = vadd.f32 %v3884_v37, %v2705_v54  ;;  %v2985_v7 = vmax.f32 %v2953_v13, 0.0 }
 0x1f7   : > { %v2812_v44 = vpop.f32.mrf.mxu0  ;;  %v2707_v42 = vadd.f32 %v2616_v5, %v2479_v60  ;;  %v2480_v5 = vadd.f32 %v5330_v12, %v2274_v21 }
 0x1f8   : > { %v3013_v35 = vadd.f32 %v3012_v27, %v2982_v26  ;;  %v2983_v53 = vmax.f32 %v2951_v23, 0.0  ;;  %v2915_v25 = vadd.f32 %v2812_v44, %v2703_v24  ;;  %v5422_v2 = vpop.f32.mrf.mxu1  ;;  %v2956_v20 = vadd.f32 %v5389_v29, %v2917_v38 }
 0x1f9   : > { %v3885_v51 = vpop.f32.mrf.mxu0  ;;  %v2709_v26 = vadd.f32 %v5395_v4, %v5318_v52  ;;  %v2710_v44 = vadd.f32 %v5403_v34, %v5326_v22  ;;  %v2708_v54 = vadd.f32 %v2619_v63, %v2480_v5  ;;  %v5642_v5 = vld [vmem:[#allocation15_spill] sm:$0xff] }
 0x1fa   : > { %v3014_v6 = vadd.f32 %v3013_v35, %v2983_v53  ;;  %v2954_v18 = vadd.f32 %v5389_v29, %v2915_v25  ;;  %v2635_v31 = vpop.f32.mrf.mxu1  ;;  %v2918_v8 = vadd.f32 %v3885_v51, %v2706_v57  ;;  %v2988_v24 = vmax.f32 %v2956_v20, 0.0 }
 0x1fb   : > { %v2815_v36 = vpop.f32.mrf.mxu0  ;;  %v2483_v53 = vadd.f32 %v5337_v50, %v2277_v41  ;;  %v2484_v50 = vadd.f32 %v5344_v17, %v2278_v9  ;;  %v5643_v41 = vld [vmem:[#allocation20_spill] sm:$0xff] }
 0x1fc   : > { %v3015_v40 = vadd.f32 %v3014_v6, %v2984_v28  ;;  %v2916_v11 = vadd.f32 %v2815_v36, %v2704_v14  ;;  %v5426_v0 = vpop.f32.mrf.mxu1  ;;  %v2986_v61 = vmax.f32 %v2954_v18, 0.0  ;;  %v2957_v49 = vadd.f32 %v5389_v29, %v2918_v8 }
 0x1fd   : > { %v3888_v43 = vpop.f32.mrf.mxu0  ;;  %v2711_v51 = vadd.f32 %v2632_v3, %v2483_v53  ;;  %v2713_v18 = vadd.f32 %v5411_v19, %v5333_v62  ;;  %v2714_v3 = vadd.f32 %v5422_v2, %v5340_v10  ;;  %v2487_v62 = vadd.f32 %v5351_v58, %v2281_v48 }
 0x1fe   : > { %v3016_v33 = vadd.f32 %v3015_v40, %v2985_v7  ;;  %v2955_v47 = vadd.f32 %v5389_v29, %v2916_v11  ;;  %v2648_v56 = vpop.f32.mrf.mxu1  ;;  %v2921_v35 = vadd.f32 %v3888_v43, %v2709_v26  ;;  %v2989_v52 = vmax.f32 %v2957_v49, 0.0 }
 0x1ff   : > { %v2828_v1 = vpop.f32.mrf.mxu0  ;;  %v2712_v40 = vadd.f32 %v2635_v31, %v2484_v50 }
 0x200   : > { %v3017_v15 = vadd.f32 %v3016_v33, %v2986_v61  ;;  %v2987_v37 = vmax.f32 %v2955_v47, 0.0  ;;  %v2919_v39 = vadd.f32 %v2828_v1, %v2707_v42  ;;  %v5436_v27 = vpop.f32.mrf.mxu1  ;;  %v2960_v22 = vadd.f32 %v5389_v29, %v2921_v35  ;;  %v5640_v1 = vld [vmem:[#allocation11_spill] sm:$0xff] }
 0x201   : > { %v3889_v23 = vpop.f32.mrf.mxu0  ;;  %v2282_v59 = vadd.f32 %v5641_v30, %v5640_v1 }
 0x202   : > { %v3018_v46 = vadd.f32 %v3017_v15, %v2987_v37  ;;  %v2958_v45 = vadd.f32 %v5389_v29, %v2919_v39  ;;  %v2651_v13 = vpop.f32.mrf.mxu1  ;;  %v2922_v55 = vadd.f32 %v3889_v23, %v2710_v44  ;;  %v2992_v8 = vmax.f32 %v2960_v22, 0.0 }
 0x203   : > { %v2831_v12 = vpop.f32.mrf.mxu0  ;;  %v2715_v15 = vadd.f32 %v2648_v56, %v2487_v62  ;;  %v2488_v26 = vadd.f32 %v5642_v5, %v2282_v59  ;;  %v5644_v56 = vld [vmem:[#allocation4_spill] sm:$0xff] }
 0x204   : > { %v3019_v4 = vadd.f32 %v3018_v46, %v2988_v24  ;;  %v2920_v57 = vadd.f32 %v2831_v12, %v2708_v54  ;;  %v5444_v25 = vpop.f32.mrf.mxu1  ;;  %v2990_v14 = vmax.f32 %v2958_v45, 0.0  ;;  %v2961_v36 = vadd.f32 %v5389_v29, %v2922_v55  ;;  %v5645_v54 = vld [vmem:[#allocation16_spill] sm:$0xff]  ;;  %v5646_v12 = vld [vmem:[#allocation5_spill] sm:$0xff] }
 0x205   : > { %v3892_v32 = vpop.f32.mrf.mxu0  ;;  %v2717_v24 = vadd.f32 %v5426_v0, %v5643_v41  ;;  %v2285_v35 = vadd.f32 %v5645_v54, %v5644_v56  ;;  %v2718_v53 = vadd.f32 %v5436_v27, %v5646_v12 }
 0x206   : > { %v3020_v28 = vadd.f32 %v3019_v4, %v2989_v52  ;;  %v2959_v34 = vadd.f32 %v5389_v29, %v2920_v57  ;;  %v2664_v63 = vpop.f32.mrf.mxu1  ;;  %v2925_v42 = vadd.f32 %v3892_v32, %v2713_v18  ;;  %v2993_v61 = vmax.f32 %v2961_v36, 0.0 }
 0x207   : > { %v2844_v6 = vpop.f32.mrf.mxu0  ;;  %v2716_v52 = vadd.f32 %v2651_v13, %v2488_v26 }
 0x208   : > { %v3021_v38 = vadd.f32 %v3020_v28, %v2990_v14  ;;  %v2923_v60 = vadd.f32 %v2844_v6, %v2711_v51  ;;  %v2991_v7 = vmax.f32 %v2959_v34, 0.0  ;;  %v3867_v43 = vpop.f32.mrf.mxu1  ;;  %v2964_v2 = vadd.f32 %v5389_v29, %v2925_v42  ;;  %v5647_v14 = vld [vmem:[#allocation19_spill] sm:$0xff] }
 0x209   : > { %v3893_v16 = vpop.f32.mrf.mxu0  ;;  %v2491_v0 = vadd.f32 %v5647_v14, %v2285_v35 }
 0x20a   : > { %v3022_v11 = vadd.f32 %v3021_v38, %v2991_v7  ;;  %v2962_v17 = vadd.f32 %v5389_v29, %v2923_v60  ;;  %v2926_v47 = vadd.f32 %v3893_v16, %v2714_v3  ;;  %v2667_v37 = vpop.f32.mrf.mxu1  ;;  %v2996_v4 = vmax.f32 %v2964_v2, 0.0  ;;  %v5648_v38 = vld [vmem:[#allocation9_spill] sm:$0xff]  ;;  %v5649_v60 = vld [vmem:[#allocation18_spill] sm:$0xff] }
 0x20b   : > { %v2847_v20 = vpop.f32.mrf.mxu0  ;;  %v2286_v18 = vadd.f32 %v5649_v60, %v5648_v38  ;;  %v2719_v36 = vadd.f32 %v2664_v63, %v2491_v0  ;;  %v5652_v63 = vld [vmem:[#allocation14_spill] sm:$0xff] }
 0x20c   : > { %v2924_v19 = vadd.f32 %v2847_v20, %v2712_v40  ;;  %v3023_v33 = vadd.f32 %v3022_v11, %v2992_v8  ;;  %v2994_v31 = vmax.f32 %v2962_v17, 0.0  ;;  %v2965_v45 = vadd.f32 %v5389_v29, %v2926_v47  ;;  %v3870_v57 = vpop.f32.mrf.mxu1  ;;  %v5650_v40 = vld [vmem:[#allocation3_spill] sm:$0xff]  ;;  %v5651_v17 = vld [vmem:[#allocation17_spill] sm:$0xff] }
 0x20d   : > { %v3896_v21 = vpop.f32.mrf.mxu0  ;;  %v2492_v8 = vadd.f32 %v5650_v40, %v2286_v18  ;;  %v2721_v20 = vadd.f32 %v5444_v25, %v5651_v17 }
 0x20e   : > { %v2963_v10 = vadd.f32 %v5389_v29, %v2924_v19  ;;  %v3024_v49 = vadd.f32 %v3023_v33, %v2993_v61  ;;  %v2929_v32 = vadd.f32 %v3896_v21, %v2717_v24  ;;  %v2997_v22 = vmax.f32 %v2965_v45, 0.0  ;;  %v2680_v7 = vpop.f32.mrf.mxu1  ;;  %v5653_v33 = vld [vmem:[#allocation22_spill] sm:$0xff]  ;;  %v5654_v21 = vld [vmem:[#allocation21_spill] sm:$0xff]  ;;  %v5656_v24 = vld [vmem:[#allocation7_spill] sm:$0xff] }
 0x20f   : > { %v2860_v39 = vpop.f32.mrf.mxu0  ;;  %v2289_v47 = vadd.f32 %v5653_v33, %v5652_v63  ;;  %v2722_v1 = vadd.f32 %v3867_v43, %v5654_v21  ;;  %v2720_v30 = vadd.f32 %v2667_v37, %v2492_v8 }
 0x210   : > { %v2995_v58 = vmax.f32 %v2963_v10, 0.0  ;;  %v2927_v23 = vadd.f32 %v2860_v39, %v2715_v15  ;;  %v3025_v46 = vadd.f32 %v3024_v49, %v2994_v31  ;;  %v2968_v13 = vadd.f32 %v5389_v29, %v2929_v32  ;;  %v3871_v15 = vpop.f32.mrf.mxu1  ;;  %v5655_v39 = vld [vmem:[#allocation24_spill] sm:$0xff] }
 0x211   : > { %v3897_v44 = vpop.f32.mrf.mxu0  ;;  %v2495_v5 = vadd.f32 %v5655_v39, %v2289_v47  ;;  %v5659_v32 = vld [vmem:[#allocation12_spill] sm:$0xff] }
 0x212   : > { %v3026_v55 = vadd.f32 %v3025_v46, %v2995_v58  ;;  %v2966_v9 = vadd.f32 %v5389_v29, %v2927_v23  ;;  %v2930_v6 = vadd.f32 %v3897_v44, %v2718_v53  ;;  %v3000_v59 = vmax.f32 %v2968_v13, 0.0  ;;  %v5657_v46 = vld [vmem:[#allocation10_spill] sm:$0xff]  ;;  %v2683_v37 = vpop.f32.mrf.mxu1  ;;  %v5658_v53 = vld [vmem:[#allocation8_spill] sm:$0xff] }
 0x213   : > { %v2863_v51 = vpop.f32.mrf.mxu0  ;;  %v2290_v45 = vadd.f32 %v5657_v46, %v5656_v24  ;;  %v2723_v44 = vadd.f32 %v2680_v7, %v2495_v5 }
 0x214   : > { %v2928_v28 = vadd.f32 %v2863_v51, %v2716_v52  ;;  %v3027_v34 = vadd.f32 %v3026_v55, %v2996_v4  ;;  %v2998_v16 = vmax.f32 %v2966_v9, 0.0  ;;  %v2969_v19 = vadd.f32 %v5389_v29, %v2930_v6 }
 0x215   : > { %v3900_v50 = vpop.f32.mrf.mxu0  ;;  %v2496_v52 = vadd.f32 %v5658_v53, %v2290_v45  ;;  %v2725_v9 = vadd.f32 %v3870_v57, %v5659_v32 }
 0x216   : > { %v2967_v27 = vadd.f32 %v5389_v29, %v2928_v28  ;;  %v3028_v48 = vadd.f32 %v3027_v34, %v2997_v22  ;;  %v2933_v2 = vadd.f32 %v3900_v50, %v2721_v20  ;;  %v3001_v26 = vmax.f32 %v2969_v19, 0.0  ;;  %v5660_v28 = vld [vmem:[#allocation23_spill] sm:$0xff] }
 0x217   : > { %v2876_v3 = vpop.f32.mrf.mxu0  ;;  %v2726_v22 = vadd.f32 %v3871_v15, %v5660_v28  ;;  %v2724_v34 = vadd.f32 %v2683_v37, %v2496_v52 }
 0x218   : > { %v2999_v11 = vmax.f32 %v2967_v27, 0.0  ;;  %v2931_v42 = vadd.f32 %v2876_v3, %v2719_v36  ;;  %v3029_v62 = vadd.f32 %v3028_v48, %v2998_v16  ;;  %v2972_v56 = vadd.f32 %v5389_v29, %v2933_v2 }
 0x219   : > { %v3901_v61 = vpop.f32.mrf.mxu0 }
 0x21a   : > { %v3030_v10 = vadd.f32 %v3029_v62, %v2999_v11  ;;  %v2970_v31 = vadd.f32 %v5389_v29, %v2931_v42  ;;  %v2934_v23 = vadd.f32 %v3901_v61, %v2722_v1  ;;  %v3004_v6 = vmax.f32 %v2972_v56, 0.0 }
 0x21b   : > { %v2879_v49 = vpop.f32.mrf.mxu0 }
 0x21c   : > { %v2932_v25 = vadd.f32 %v2879_v49, %v2720_v30  ;;  %v3031_v58 = vadd.f32 %v3030_v10, %v3000_v59  ;;  %v3002_v54 = vmax.f32 %v2970_v31, 0.0  ;;  %v2973_v14 = vadd.f32 %v5389_v29, %v2934_v23  ;;  %v3427_v59 = vld [vmem:[%s5513_s4] ss:$0 sm:$0xff] }
 0x21d   : > { %v3904_v41 = vpop.f32.mrf.mxu0 }
 0x21e   : > { %v2971_v43 = vadd.f32 %v5389_v29, %v2932_v25  ;;  %v3032_v35 = vadd.f32 %v3031_v58, %v3001_v26  ;;  %v2937_v38 = vadd.f32 %v3904_v41, %v2725_v9  ;;  %v3005_v27 = vmax.f32 %v2973_v14, 0.0 }
 0x21f   : > { %v2892_v12 = vpop.f32.mrf.mxu0 }
 0x220   : > { %v3003_v4 = vmax.f32 %v2971_v43, 0.0  ;;  %v2935_v55 = vadd.f32 %v2892_v12, %v2723_v44  ;;  %v3033_v51 = vadd.f32 %v3032_v35, %v3002_v54  ;;  %v2976_v57 = vadd.f32 %v5389_v29, %v2937_v38 }
 0x221   : > { %v3905_v0 = vpop.f32.mrf.mxu0 }
 0x222   : > { %v3034_v50 = vadd.f32 %v3033_v51, %v3003_v4  ;;  %v2974_v60 = vadd.f32 %v5389_v29, %v2935_v55  ;;  %v2938_v7 = vadd.f32 %v3905_v0, %v2726_v22  ;;  %v3008_v42 = vmax.f32 %v2976_v57, 0.0 }
 0x223   : > { %v2895_v18 = vpop.f32.mrf.mxu0 }
 0x224   : > { %v2936_v36 = vadd.f32 %v2895_v18, %v2724_v34  ;;  %v3035_v13 = vadd.f32 %v3034_v50, %v3004_v6  ;;  %v3006_v48 = vmax.f32 %v2974_v60, 0.0  ;;  %v2977_v11 = vadd.f32 %v5389_v29, %v2938_v7 }
 0x226   : > { %v2975_v16 = vadd.f32 %v5389_v29, %v2936_v36  ;;  %v3036_v3 = vadd.f32 %v3035_v13, %v3005_v27  ;;  %v3009_v20 = vmax.f32 %v2977_v11, 0.0 }
 0x228   : > { %v3007_v40 = vmax.f32 %v2975_v16, 0.0  ;;  %v3037_v8 = vadd.f32 %v3036_v3, %v3006_v48 }
 0x22a   : > { %v3038_v17 = vadd.f32 %v3037_v8, %v3007_v40 }
 0x22c   : > { %v3039_v62 = vadd.f32 %v3038_v17, %v3008_v42 }
 0x22e   : > { %v3040_v19 = vadd.f32 %v3039_v62, %v3009_v20 }
 0x230   : > { %v3041_v61 = vrot.slane %v3040_v19, 4 }
 0x232   : > { %v3042_v63 = vadd.f32 %v3041_v61, %v3040_v19 }
 0x234   : > { %v3043_v33 = vrot.slane %v3042_v63, 2 }
 0x236   : > { %v3044_v47 = vadd.f32 %v3043_v33, %v3042_v63 }
 0x238   : > { %v3045_v21 = vrot.slane %v3044_v47, 1 }
 0x23a   : > { %v3046_v1 = vadd.f32 %v3045_v21, %v3044_v47 }
 0x23c   : > { %v3047_v30 = vmul.f32 0.00390625, %v3046_v1 }
 0x23e   : > { %3939 = vmatmul.mubr.f32.vlgmr.msra.gmra.mxu1 %v3047_v30 }
 0x2fe   : > { %v3137_v29 = vpop.f32.mrf.mxu1 }
 0x2ff   : > { %v3138_v15 = vadd.f32 %v3427_v59, %v3137_v29 }
 0x300   : > { %v3940_v10 = vpop.f32.mrf.mxu1 }
 0x301   : > { %3141 = vst [vmem:[%s222_s10] sm:$0xff] %v3138_v15 }
 0x302 PF: > { %s15_s18 = sadd.s32 1, %s3988_s18  }
 0x303   : > { %p12_p4 = scmp.ge.s32.totalorder %s15_s18, 4  }
 0x305   :  { %14 = sbr.rel (!%p12_p4) target bundleno = 1 (0x1), region = 78 }

</bundles_post_ra>
